<compile_context>
chip_gen: v7x
topology: tpu7x:2x2x1
jax: 0.10.0
libtpu: 0.0.40
codegen_flags: <defaults>
</compile_context>

<pallas_src>
import jax
import jax.numpy as jnp
from jax.experimental import pallas as pl
from jax.experimental.pallas import tpu as pltpu


def _leaky_relu(x, slope=0.01):
    return jnp.where(x > 0, x, slope * x)


def _round_up(x, m):
    return ((x + m - 1) // m) * m


def mlp_kernel(x_ref, w1_ref, b1_ref, w2_ref, b2_ref, w3_ref, b3_ref,
               w4_ref, b4_ref, logit_ref, h_ref, acc_ref):
    k = pl.program_id(1)

    # fc1: accumulate x @ w1 over the K grid axis into an f32 VMEM scratch.
    @pl.when(k == 0)
    def _init():
        acc_ref[...] = jnp.zeros_like(acc_ref)

    acc_ref[...] += jnp.dot(x_ref[...], w1_ref[...],
                            preferred_element_type=jnp.float32)

    # On the last K step, finish fc1 and run fc2..fc4 (dropout == identity in eval mode).
    @pl.when(k == pl.num_programs(1) - 1)
    def _finish():
        h = _leaky_relu(acc_ref[...] + b1_ref[...])                       # f32
        h = _leaky_relu(jnp.dot(h.astype(jnp.bfloat16), w2_ref[...],
                                preferred_element_type=jnp.float32) + b2_ref[...])
        h = _leaky_relu(jnp.dot(h.astype(jnp.bfloat16), w3_ref[...],
                                preferred_element_type=jnp.float32) + b3_ref[...])
        h_ref[...] = h.astype(h_ref.dtype)                                # returned embedding
        logit = jnp.dot(h.astype(jnp.bfloat16), w4_ref[...],
                        preferred_element_type=jnp.float32) + b4_ref[...]
        logit_ref[...] = logit.astype(logit_ref.dtype)


def mlp_forward(x, params, *, tk=384):
    """x: (B, in_dim) f32. params: w1..w4 stored (in, out) f32, b1..b4 stored (1, out) f32.

    Weights/activations are cast to bf16 for the matmuls (f32 accumulation), matching the
    HBM-bandwidth-bound regime of this model. Returns (logit, h) in f32.
    """
    B, in_dim = x.shape
    h1 = params["w1"].shape[1]
    h2 = params["w2"].shape[1]
    emb = params["w3"].shape[1]
    nc = params["w4"].shape[1]

    # --- pad K (in_dim) to a multiple of the K-tile (multiple of 128) ---
    k_pad = _round_up(in_dim, tk)           # 2259 -> 2304
    # --- batch tile: multiple of 8 sublanes, capped at 128; pad batch to a full tile ---
    tb = min(_round_up(B, 8), 128)
    b_pad = _round_up(B, tb)

    xb = x.astype(jnp.bfloat16)
    xb = jnp.pad(xb, ((0, b_pad - B), (0, k_pad - in_dim)))
    w1 = jnp.pad(params["w1"].astype(jnp.bfloat16), ((0, k_pad - in_dim), (0, 0)))
    w2 = params["w2"].astype(jnp.bfloat16)
    w3 = params["w3"].astype(jnp.bfloat16)
    w4 = params["w4"].astype(jnp.bfloat16)
    b1, b2, b3, b4 = (params["b1"], params["b2"], params["b3"], params["b4"])  # f32 (1, out)

    grid = (b_pad // tb, k_pad // tk)   # (batch tiles [parallel], K tiles [arbitrary])

    def const_spec(arr):
        # Whole-array block, same block every grid step (stays resident, no re-DMA).
        return pl.BlockSpec(arr.shape, lambda i, k: (0,) * arr.ndim)

    in_specs = [
        pl.BlockSpec((tb, tk), lambda i, k: (i, k)),   # x: streamed over batch and K
        pl.BlockSpec((tk, h1), lambda i, k: (k, 0)),   # w1: streamed over K
        const_spec(b1),
        const_spec(w2), const_spec(b2),
        const_spec(w3), const_spec(b3),
        const_spec(w4), const_spec(b4),
    ]
    out_specs = (
        pl.BlockSpec((tb, nc), lambda i, k: (i, 0)),   # logits (resident across K axis)
        pl.BlockSpec((tb, emb), lambda i, k: (i, 0)),  # embedding h
    )

    logit, h = pl.pallas_call(
        mlp_kernel,
        out_shape=(jax.ShapeDtypeStruct((b_pad, nc), jnp.float32),
                   jax.ShapeDtypeStruct((b_pad, emb), jnp.float32)),
        grid=grid,
        in_specs=in_specs,
        out_specs=out_specs,
        scratch_shapes=[pltpu.VMEM((tb, h1), jnp.float32)],   # fc1 accumulator
        compiler_params=pltpu.CompilerParams(
            dimension_semantics=("parallel", "arbitrary"),
            vmem_limit_bytes=32 << 20,   # well under v7x's 64 MiB physical VMEM
        ),
    )(xb, w1, b1, w2, b2, w3, b3, w4, b4)

    return logit[:B], h[:B]


def init_params(key, in_dim=2259, h1=1000, h2=128, emb=64, num_classes=3):
    """Deterministic kaiming-normal-ish init. Weights stored transposed to (in, out)."""
    ks = jax.random.split(key, 8)

    def kaiming(k, fan_in, shape):
        return jax.random.normal(k, shape, jnp.float32) * jnp.sqrt(2.0 / fan_in)

    return {
        "w1": kaiming(ks[0], in_dim, (in_dim, h1)),
        "b1": jax.random.normal(ks[1], (1, h1), jnp.float32) * 0.01,
        "w2": kaiming(ks[2], h1, (h1, h2)),
        "b2": jax.random.normal(ks[3], (1, h2), jnp.float32) * 0.01,
        "w3": kaiming(ks[4], h2, (h2, emb)),
        "b3": jax.random.normal(ks[5], (1, emb), jnp.float32) * 0.01,
        "w4": kaiming(ks[6], emb, (emb, num_classes)),
        "b4": jax.random.normal(ks[7], (1, num_classes), jnp.float32) * 0.01,
    }


if __name__ == "__main__":
    key = jax.random.PRNGKey(0)
    kx, kp = jax.random.split(key)

    B, IN_DIM = 8, 2259  # module default dim=(2259,)
    x = jax.random.normal(kx, (B, IN_DIM), jnp.float32)
    params = init_params(kp, in_dim=IN_DIM)

    logit, h = mlp_forward(x, params)
    jax.block_until_ready((logit, h))

    # Reference with the same bf16-weight / f32-accumulate recipe (eval-mode dropout).
    def ref(x, p):
        lr = lambda v: jnp.where(v > 0, v, 0.01 * v)
        xb = x.astype(jnp.bfloat16)
        w1 = p["w1"].astype(jnp.bfloat16); w2 = p["w2"].astype(jnp.bfloat16)
        w3 = p["w3"].astype(jnp.bfloat16); w4 = p["w4"].astype(jnp.bfloat16)
        a = lr(jnp.dot(xb, w1, preferred_element_type=jnp.float32) + p["b1"])
        a = lr(jnp.dot(a.astype(jnp.bfloat16), w2, preferred_element_type=jnp.float32) + p["b2"])
        a = lr(jnp.dot(a.astype(jnp.bfloat16), w3, preferred_element_type=jnp.float32) + p["b3"])
        logit = jnp.dot(a.astype(jnp.bfloat16), w4, preferred_element_type=jnp.float32) + p["b4"]
        return logit, a

    logit_ref, h_ref = ref(x, params)
    assert logit.shape == (B, 3) and h.shape == (B, 64)
    assert jnp.allclose(logit, logit_ref, atol=1e-2, rtol=1e-2)
    assert jnp.allclose(h, h_ref, atol=1e-2, rtol=1e-2)

    print("KERNEL_OK")
</pallas_src>

<mosaic_0001>
module attributes {stable_mosaic.version = 11 : i64} {
  func.func @mlp_kernel(%arg0: i32, %arg1: i32, %arg2: memref<8x384xbf16, #tpu.memory_space<vmem>>, %arg3: memref<384x1000xbf16, #tpu.memory_space<vmem>>, %arg4: memref<1x1000xf32, #tpu.memory_space<vmem>>, %arg5: memref<1000x128xbf16, #tpu.memory_space<vmem>>, %arg6: memref<1x128xf32, #tpu.memory_space<vmem>>, %arg7: memref<128x64xbf16, #tpu.memory_space<vmem>>, %arg8: memref<1x64xf32, #tpu.memory_space<vmem>>, %arg9: memref<64x3xbf16, #tpu.memory_space<vmem>>, %arg10: memref<1x3xf32, #tpu.memory_space<vmem>>, %arg11: memref<8x3xf32, #tpu.memory_space<vmem>>, %arg12: memref<8x64xf32, #tpu.memory_space<vmem>>, %arg13: memref<8x1000xf32, #tpu.memory_space<vmem>>) attributes {dimension_semantics = [#tpu.dimension_semantics<parallel>, #tpu.dimension_semantics<arbitrary>], iteration_bounds = array<i64: 1, 6>, scalar_prefetch = 0 : i64, scratch_operands = 1 : i64, tpu.core_type = #tpu.core_type<tc>, window_params = [{transform_indices = @transform_0, window_bounds = array<i64: 8, 384>}, {transform_indices = @transform_1, window_bounds = array<i64: 384, 1000>}, {pipeline_mode = #tpu.pipeline_mode<synchronous>, transform_indices = @transform_2, window_bounds = array<i64: 1, 1000>}, {pipeline_mode = #tpu.pipeline_mode<synchronous>, transform_indices = @transform_3, window_bounds = array<i64: 1000, 128>}, {pipeline_mode = #tpu.pipeline_mode<synchronous>, transform_indices = @transform_4, window_bounds = array<i64: 1, 128>}, {pipeline_mode = #tpu.pipeline_mode<synchronous>, transform_indices = @transform_5, window_bounds = array<i64: 128, 64>}, {pipeline_mode = #tpu.pipeline_mode<synchronous>, transform_indices = @transform_6, window_bounds = array<i64: 1, 64>}, {pipeline_mode = #tpu.pipeline_mode<synchronous>, transform_indices = @transform_7, window_bounds = array<i64: 64, 3>}, {pipeline_mode = #tpu.pipeline_mode<synchronous>, transform_indices = @transform_8, window_bounds = array<i64: 1, 3>}, {transform_indices = @transform_9, window_bounds = array<i64: 8, 3>}, {transform_indices = @transform_10, window_bounds = array<i64: 8, 64>}]} {
    %c0_i32 = arith.constant 0 : i32
    %0 = arith.cmpi eq, %arg1, %c0_i32 : i32
    %1 = arith.extui %0 : i1 to i32
    %c0_i32_0 = arith.constant 0 : i32
    %2 = arith.cmpi ne, %1, %c0_i32_0 : i32
    scf.if %2 {
      %cst_9 = arith.constant 0.000000e+00 : f32
      %12 = vector.broadcast %cst_9 : f32 to vector<8x1000xf32>
      %c0_10 = arith.constant 0 : index
      %c0_11 = arith.constant 0 : index
      %13 = vector.load %arg13[%c0_10, %c0_11] : memref<8x1000xf32, #tpu.memory_space<vmem>>, vector<8x1000xf32>
      tpu.vector_store %arg13[%c0_10, %c0_11], %12 {strides = array<i32>} : memref<8x1000xf32, #tpu.memory_space<vmem>>, vector<8x1000xf32>,
    } else {
    }
    %c0 = arith.constant 0 : index
    %c0_1 = arith.constant 0 : index
    %3 = vector.load %arg13[%c0, %c0_1] : memref<8x1000xf32, #tpu.memory_space<vmem>>, vector<8x1000xf32>
    %c0_2 = arith.constant 0 : index
    %c0_3 = arith.constant 0 : index
    %4 = vector.load %arg2[%c0_2, %c0_3] : memref<8x384xbf16, #tpu.memory_space<vmem>>, vector<8x384xbf16>
    %c0_4 = arith.constant 0 : index
    %c0_5 = arith.constant 0 : index
    %5 = vector.load %arg3[%c0_4, %c0_5] : memref<384x1000xbf16, #tpu.memory_space<vmem>>, vector<384x1000xbf16>
    %cst = arith.constant dense<0.000000e+00> : vector<8x1000xf32>
    %6 = tpu.matmul %4, %5, %cst {dimension_numbers = #tpu.dot_dimension_numbers<[1], [0], [0], [1], [0, 0, 1, 1], [], []>} : vector<8x384xbf16>, vector<384x1000xbf16>, vector<8x1000xf32> -> vector<8x1000xf32>
    %7 = arith.addf %3, %6 : vector<8x1000xf32>
    %c0_6 = arith.constant 0 : index
    %c0_7 = arith.constant 0 : index
    %8 = vector.load %arg13[%c0_6, %c0_7] : memref<8x1000xf32, #tpu.memory_space<vmem>>, vector<8x1000xf32>
    tpu.vector_store %arg13[%c0_6, %c0_7], %7 {strides = array<i32>} : memref<8x1000xf32, #tpu.memory_space<vmem>>, vector<8x1000xf32>,
    %c5_i32 = arith.constant 5 : i32
    %9 = arith.cmpi eq, %arg1, %c5_i32 : i32
    %10 = arith.extui %9 : i1 to i32
    %c0_i32_8 = arith.constant 0 : i32
    %11 = arith.cmpi ne, %10, %c0_i32_8 : i32
    scf.if %11 {
      %c0_9 = arith.constant 0 : index
      %c0_10 = arith.constant 0 : index
      %12 = vector.load %arg13[%c0_9, %c0_10] : memref<8x1000xf32, #tpu.memory_space<vmem>>, vector<8x1000xf32>
      %c0_11 = arith.constant 0 : index
      %c0_12 = arith.constant 0 : index
      %13 = vector.load %arg4[%c0_11, %c0_12] : memref<1x1000xf32, #tpu.memory_space<vmem>>, vector<1x1000xf32>
      %14 = vector.broadcast %13 : vector<1x1000xf32> to vector<8x1000xf32>
      %15 = arith.addf %12, %14 : vector<8x1000xf32>
      %cst_13 = arith.constant 0.000000e+00 : f32
      %16 = vector.broadcast %cst_13 : f32 to vector<8x1000xf32>
      %17 = arith.cmpf ogt, %15, %16 : vector<8x1000xf32>
      %cst_14 = arith.constant 0.00999999977 : f32
      %18 = vector.broadcast %cst_14 : f32 to vector<8x1000xf32>
      %19 = arith.mulf %18, %15 : vector<8x1000xf32>
      %20 = arith.select %17, %15, %19 : vector<8x1000xi1>, vector<8x1000xf32>
      %21 = arith.truncf %20 : vector<8x1000xf32> to vector<8x1000xbf16>
      %c0_15 = arith.constant 0 : index
      %c0_16 = arith.constant 0 : index
      %22 = vector.load %arg5[%c0_15, %c0_16] : memref<1000x128xbf16, #tpu.memory_space<vmem>>, vector<1000x128xbf16>
      %cst_17 = arith.constant dense<0.000000e+00> : vector<8x128xf32>
      %23 = tpu.matmul %21, %22, %cst_17 {dimension_numbers = #tpu.dot_dimension_numbers<[1], [0], [0], [1], [0, 0, 1, 1], [], []>} : vector<8x1000xbf16>, vector<1000x128xbf16>, vector<8x128xf32> -> vector<8x128xf32>
      %c0_18 = arith.constant 0 : index
      %c0_19 = arith.constant 0 : index
      %24 = vector.load %arg6[%c0_18, %c0_19] : memref<1x128xf32, #tpu.memory_space<vmem>>, vector<1x128xf32>
      %25 = vector.broadcast %24 : vector<1x128xf32> to vector<8x128xf32>
      %26 = arith.addf %23, %25 : vector<8x128xf32>
      %cst_20 = arith.constant 0.000000e+00 : f32
      %27 = vector.broadcast %cst_20 : f32 to vector<8x128xf32>
      %28 = arith.cmpf ogt, %26, %27 : vector<8x128xf32>
      %cst_21 = arith.constant 0.00999999977 : f32
      %29 = vector.broadcast %cst_21 : f32 to vector<8x128xf32>
      %30 = arith.mulf %29, %26 : vector<8x128xf32>
      %31 = arith.select %28, %26, %30 : vector<8x128xi1>, vector<8x128xf32>
      %32 = arith.truncf %31 : vector<8x128xf32> to vector<8x128xbf16>
      %c0_22 = arith.constant 0 : index
      %c0_23 = arith.constant 0 : index
      %33 = vector.load %arg7[%c0_22, %c0_23] : memref<128x64xbf16, #tpu.memory_space<vmem>>, vector<128x64xbf16>
      %cst_24 = arith.constant dense<0.000000e+00> : vector<8x64xf32>
      %34 = tpu.matmul %32, %33, %cst_24 {dimension_numbers = #tpu.dot_dimension_numbers<[1], [0], [0], [1], [0, 0, 1, 1], [], []>} : vector<8x128xbf16>, vector<128x64xbf16>, vector<8x64xf32> -> vector<8x64xf32>
      %c0_25 = arith.constant 0 : index
      %c0_26 = arith.constant 0 : index
      %35 = vector.load %arg8[%c0_25, %c0_26] : memref<1x64xf32, #tpu.memory_space<vmem>>, vector<1x64xf32>
      %36 = vector.broadcast %35 : vector<1x64xf32> to vector<8x64xf32>
      %37 = arith.addf %34, %36 : vector<8x64xf32>
      %cst_27 = arith.constant 0.000000e+00 : f32
      %38 = vector.broadcast %cst_27 : f32 to vector<8x64xf32>
      %39 = arith.cmpf ogt, %37, %38 : vector<8x64xf32>
      %cst_28 = arith.constant 0.00999999977 : f32
      %40 = vector.broadcast %cst_28 : f32 to vector<8x64xf32>
      %41 = arith.mulf %40, %37 : vector<8x64xf32>
      %42 = arith.select %39, %37, %41 : vector<8x64xi1>, vector<8x64xf32>
      %c0_29 = arith.constant 0 : index
      %c0_30 = arith.constant 0 : index
      %43 = vector.load %arg12[%c0_29, %c0_30] : memref<8x64xf32, #tpu.memory_space<vmem>>, vector<8x64xf32>
      tpu.vector_store %arg12[%c0_29, %c0_30], %42 {strides = array<i32>} : memref<8x64xf32, #tpu.memory_space<vmem>>, vector<8x64xf32>,
      %44 = arith.truncf %42 : vector<8x64xf32> to vector<8x64xbf16>
      %c0_31 = arith.constant 0 : index
      %c0_32 = arith.constant 0 : index
      %45 = vector.load %arg9[%c0_31, %c0_32] : memref<64x3xbf16, #tpu.memory_space<vmem>>, vector<64x3xbf16>
      %cst_33 = arith.constant dense<0.000000e+00> : vector<8x3xf32>
      %46 = tpu.matmul %44, %45, %cst_33 {dimension_numbers = #tpu.dot_dimension_numbers<[1], [0], [0], [1], [0, 0, 1, 1], [], []>} : vector<8x64xbf16>, vector<64x3xbf16>, vector<8x3xf32> -> vector<8x3xf32>
      %c0_34 = arith.constant 0 : index
      %c0_35 = arith.constant 0 : index
      %47 = vector.load %arg10[%c0_34, %c0_35] : memref<1x3xf32, #tpu.memory_space<vmem>>, vector<1x3xf32>
      %48 = vector.broadcast %47 : vector<1x3xf32> to vector<8x3xf32>
      %49 = arith.addf %46, %48 : vector<8x3xf32>
      %c0_36 = arith.constant 0 : index
      %c0_37 = arith.constant 0 : index
      %50 = vector.load %arg11[%c0_36, %c0_37] : memref<8x3xf32, #tpu.memory_space<vmem>>, vector<8x3xf32>
      tpu.vector_store %arg11[%c0_36, %c0_37], %49 {strides = array<i32>} : memref<8x3xf32, #tpu.memory_space<vmem>>, vector<8x3xf32>,
    } else {
    }
    return
  }
  func.func @transform_0(%arg0: i32, %arg1: i32) -> (i32, i32) {
    %c0_i32 = arith.constant 0 : i32
    return %arg0, %arg1 : i32, i32
  }
  func.func @transform_1(%arg0: i32, %arg1: i32) -> (i32, i32) {
    %c0_i32 = arith.constant 0 : i32
    %c0_i32_0 = arith.constant 0 : i32
    return %arg1, %c0_i32 : i32, i32
  }
  func.func @transform_2(%arg0: i32, %arg1: i32) -> (i32, i32) {
    %c0_i32 = arith.constant 0 : i32
    %c0_i32_0 = arith.constant 0 : i32
    %c0_i32_1 = arith.constant 0 : i32
    return %c0_i32, %c0_i32_0 : i32, i32
  }
  func.func @transform_3(%arg0: i32, %arg1: i32) -> (i32, i32) {
    %c0_i32 = arith.constant 0 : i32
    %c0_i32_0 = arith.constant 0 : i32
    %c0_i32_1 = arith.constant 0 : i32
    return %c0_i32, %c0_i32_0 : i32, i32
  }
  func.func @transform_4(%arg0: i32, %arg1: i32) -> (i32, i32) {
    %c0_i32 = arith.constant 0 : i32
    %c0_i32_0 = arith.constant 0 : i32
    %c0_i32_1 = arith.constant 0 : i32
    return %c0_i32, %c0_i32_0 : i32, i32
  }
  func.func @transform_5(%arg0: i32, %arg1: i32) -> (i32, i32) {
    %c0_i32 = arith.constant 0 : i32
    %c0_i32_0 = arith.constant 0 : i32
    %c0_i32_1 = arith.constant 0 : i32
    return %c0_i32, %c0_i32_0 : i32, i32
  }
  func.func @transform_6(%arg0: i32, %arg1: i32) -> (i32, i32) {
    %c0_i32 = arith.constant 0 : i32
    %c0_i32_0 = arith.constant 0 : i32
    %c0_i32_1 = arith.constant 0 : i32
    return %c0_i32, %c0_i32_0 : i32, i32
  }
  func.func @transform_7(%arg0: i32, %arg1: i32) -> (i32, i32) {
    %c0_i32 = arith.constant 0 : i32
    %c0_i32_0 = arith.constant 0 : i32
    %c0_i32_1 = arith.constant 0 : i32
    return %c0_i32, %c0_i32_0 : i32, i32
  }
  func.func @transform_8(%arg0: i32, %arg1: i32) -> (i32, i32) {
    %c0_i32 = arith.constant 0 : i32
    %c0_i32_0 = arith.constant 0 : i32
    %c0_i32_1 = arith.constant 0 : i32
    return %c0_i32, %c0_i32_0 : i32, i32
  }
  func.func @transform_9(%arg0: i32, %arg1: i32) -> (i32, i32) {
    %c0_i32 = arith.constant 0 : i32
    %c0_i32_0 = arith.constant 0 : i32
    return %arg0, %c0_i32 : i32, i32
  }
  func.func @transform_10(%arg0: i32, %arg1: i32) -> (i32, i32) {
    %c0_i32 = arith.constant 0 : i32
    %c0_i32_0 = arith.constant 0 : i32
    return %arg0, %c0_i32 : i32, i32
  }
}

</mosaic_0001>

<bundles_post_ra>
// kernel: tpu_custom_call.1
= control target key start
LH: loop header
LB: loop body
LE: loop exit
PB: predicated region body
PF: predicated region fallthrough
CT: control target
= control target key end

     0   :  { %16 = vsyncpa [#allocation4], 0  ;;  %s3656_s13 = smov 0   ;;  %s3658_s14 = smov 0   ;;  %s4241_s0 = inlined_call_operand.vmem [shape: bf16[8,2304], index: 0, kind: input, shape index: {}]   ;;  %s4242_s1 = inlined_call_operand.vmem [shape: bf16[2304,1000], index: 1, kind: input, shape index: {}]   ;;  %s4243_s2 = inlined_call_operand.vmem [shape: f32[1,1000], index: 2, kind: input, shape index: {}]   ;;  %s4244_s3 = inlined_call_operand.vmem [shape: bf16[1000,128], index: 3, kind: input, shape index: {}]   ;;  %s4245_s4 = inlined_call_operand.vmem [shape: f32[1,128], index: 4, kind: input, shape index: {}]   ;;  %s4246_s5 = inlined_call_operand.vmem [shape: bf16[128,64], index: 5, kind: input, shape index: {}]   ;;  %s4247_s6 = inlined_call_operand.vmem [shape: f32[1,64], index: 6, kind: input, shape index: {}]   ;;  %s4248_s7 = inlined_call_operand.vmem [shape: bf16[64,3], index: 7, kind: input, shape index: {}]   ;;  %s4249_s8 = inlined_call_operand.vmem [shape: f32[1,3], index: 8, kind: input, shape index: {}]   ;;  %s4250_s9 = inlined_call_operand.vmem [shape: f32[8,3], index: 9, kind: output, shape index: {0}]   ;;  %s4251_s10 = inlined_call_operand.hbm [shape: f32[8,64], index: 10, kind: output, shape index: {1}]  }
   0x1   :  { %s3660_s15 = smov 0  }
   0x2 LB: > { %s3025_s16 = sadd.s32 4294967295, %s3593_s15   ;;  %s31_s17 = sadd.s32 1, %s3589_s14  ;;  %s3593_s15 = sphi %s3660_s15, %s22_s15   ;;  %s3589_s14 = sphi %s3658_s14, %s4254_s14   ;;  %s3585_s13 = sphi %s3656_s13, %s4253_s13  }
   0x3   : > { %p32_p0 = scmp.ge.s32.totalorder %s31_s17, 6  ;;  %p3028_p1 = scmp.ge.s32.totalorder %s3593_s15, 1 }
   0x4   : > { %p347_p2 = scmp.lt.s32.totalorder %s3593_s15, 7 }
   0x5   : > { %s4256_s17 = smov (%p32_p0, %s31_s17), 0 }
   0x6   : > { %p348_p3 = pnand %p3028_p1, %p347_p2 }
   0x7   : > { %s394_s18 = smul.u32 (!%p348_p3), 3, %s3585_s13  ;;  %p3032_p6 = scmp.ne.s32.totalorder (!%p348_p3), %s3585_s13, 0 }
   0x8   : > { %351 = sbr.rel (%p348_p3) target bundleno = 1183 (0x49f), region = 56 }
   0x9   : > { %s404_s19 = smul.u32 (!%p348_p3), 48, %s3585_s13  ;;  %p397_p4 = scmp.lt.s32.totalorder (!%p348_p3), %s394_s18, 17 }
   0xb   : > { %p405_p5 = scmp.lt.s32.totalorder (!%p348_p3), %s404_s19, 287 }
   0xf   : > { %s4258_s18 = smov (!%p397_p4, %s394_s18), 17  ;;  %s4260_s19 = smov (!%p405_p5, %s404_s19), 287 }
  0x10   : > { %s3029_s20 = sshll.u32 %s4258_s18, 2  ;;  %s3314_s24 = sshll.u32 %s4260_s19, 5  ;;  %vm427_vm0 = vcmask (!%p3032_p6), 850944   ;;  %v3595_v0 = vmov (!%p3032_p6), 0.0  }
  0x11   : > { %s3682_s23 = scalar_lea.vmem %s4241_s0, %s3029_s20  ;;  %s3687_s27 = scalar_lea.vmem %s4242_s1, %s3314_s24  ;;  %420 = vst [vmem:[#allocation2] sm:$0xff] (!%p3032_p6), %v3595_v0  ;;  %421 = vst [vmem:[#allocation2 + $0x8] sm:$0xff] (!%p3032_p6), %v3595_v0 }
  0x12   : > { %419 = sbr.rel (%p3032_p6) target bundleno = 25 (0x19), region = 60  ;;  %422 = vst [vmem:[#allocation2 + $0x10] sm:$0xff] (!%p3032_p6), %v3595_v0  ;;  %423 = vst [vmem:[#allocation2 + $0x18] sm:$0xff] (!%p3032_p6), %v3595_v0 }
  0x13   : > { %424 = vst [vmem:[#allocation2 + $0x20] sm:$0xff] (!%p3032_p6), %v3595_v0  ;;  %425 = vst [vmem:[#allocation2 + $0x28] sm:$0xff] (!%p3032_p6), %v3595_v0 }
  0x14   : > { %426 = vst [vmem:[#allocation2 + $0x30] sm:$0xff] (!%p3032_p6), %v3595_v0  ;;  %428 = vst.msk [vmem:[#allocation2 + $0x38] sm:$0xff] (!%p3032_p6), %vm427_vm0, %v3595_v0 }
  0x19 PF: > { %v439_v1 = vld [vmem:[%s3687_s27] sm:$0xff]  ;;  %v3596_v9 = vmov 0   ;;  %vm1945_vm1 = vcmask 850944   ;;  %p3228_p7 = scmp.ne.s32.totalorder %s3585_s13, 5 }
  0x1a   : > { %v443_v2 = vld [vmem:[%s3687_s27 + $0x20] sm:$0xff]  ;;  %1675 = vmatprep.mubr.bf16.mxu1 %v3596_v9  ;;  %vm2551_vm10 = vcmask (!%p3228_p7), 1043456   ;;  %vm3599_vm11 = vmmov (!%p3228_p7), 0   ;;  %vm2833_vm14 = vcmask (!%p3228_p7), 523264   ;;  %vm2918_vm15 = vcmask (!%p3228_p7), 23552  }
  0x1b   : > { %v567_v3 = vld [vmem:[%s3687_s27 + $0x400] sm:$0xff]  ;;  %v3037_v4 = vcombine.high %v439_v1, %v443_v2  ;;  %v3036_v6 = vcombine.low %v439_v1, %v443_v2 }
  0x1c   : > { %v571_v5 = vld [vmem:[%s3687_s27 + $0x420] sm:$0xff] }
  0x1d   : > { %v447_v7 = vld [vmem:[%s3687_s27 + $0x40] sm:$0xff]  ;;  %v3165_v10 = vcombine.high %v567_v3, %v571_v5  ;;  %v3164_v11 = vcombine.low %v567_v3, %v571_v5  ;;  %1602 = vmatprep.subr.bf16.mxu0 %v3037_v4  ;;  %v440_v4 = vld [vmem:[%s3687_s27 + $0x8] sm:$0xff] }
  0x1e   : > { %v451_v8 = vld [vmem:[%s3687_s27 + $0x60] sm:$0xff]  ;;  %1603 = vmatpush1.bf16.msra.mxu0 %v3036_v6  ;;  %v444_v5 = vld [vmem:[%s3687_s27 + $0x28] sm:$0xff] }
  0x1f   : > { %v3045_v12 = vcombine.high %v447_v7, %v451_v8  ;;  %v575_v13 = vld [vmem:[%s3687_s27 + $0x440] sm:$0xff]  ;;  %1643 = vmatprep.subr.bf16.mxu1 %v3165_v10  ;;  %v3044_v20 = vcombine.low %v447_v7, %v451_v8  ;;  %v3039_v10 = vcombine.high %v440_v4, %v444_v5 }
  0x20   : > { %v579_v14 = vld [vmem:[%s3687_s27 + $0x460] sm:$0xff]  ;;  %1644 = vmatpush1.bf16.msra.mxu1 %v3164_v11 }
  0x21   : > { %v455_v15 = vld [vmem:[%s3687_s27 + $0x80] sm:$0xff]  ;;  %v3173_v16 = vcombine.high %v575_v13, %v579_v14  ;;  %1604 = vmatprep.subr.bf16.mxu0 %v3045_v12  ;;  %v3172_v21 = vcombine.low %v575_v13, %v579_v14  ;;  %v448_v13 = vld [vmem:[%s3687_s27 + $0x48] sm:$0xff] }
  0x22   : > { %v459_v17 = vld [vmem:[%s3687_s27 + $0xa0] sm:$0xff]  ;;  %1605 = vmatpush1.bf16.msra.mxu0 %v3044_v20  ;;  %v452_v14 = vld [vmem:[%s3687_s27 + $0x68] sm:$0xff] }
  0x23   : > { %v583_v18 = vld [vmem:[%s3687_s27 + $0x480] sm:$0xff]  ;;  %v3053_v22 = vcombine.high %v455_v15, %v459_v17  ;;  %1645 = vmatprep.subr.bf16.mxu1 %v3173_v16  ;;  %v3052_v28 = vcombine.low %v455_v15, %v459_v17  ;;  %v3740_v15 = vld [vmem:[%s3682_s23 + $0x8] ss:$0 sps:$4 sm:$0xff]   ;;  %v3038_v17 = vcombine.low %v440_v4, %v444_v5 }
  0x24   : > { %v587_v19 = vld [vmem:[%s3687_s27 + $0x4a0] sm:$0xff]  ;;  %1646 = vmatpush1.bf16.msra.mxu1 %v3172_v21 }
  0x25   : > { %v3181_v23 = vcombine.high %v583_v18, %v587_v19  ;;  %v463_v24 = vld [vmem:[%s3687_s27 + $0xc0] sm:$0xff]  ;;  %1606 = vmatprep.subr.bf16.mxu0 %v3053_v22  ;;  %v3180_v29 = vcombine.low %v583_v18, %v587_v19  ;;  %v3047_v19 = vcombine.high %v448_v13, %v452_v14  ;;  %v456_v22 = vld [vmem:[%s3687_s27 + $0x88] sm:$0xff] }
  0x26   : > { %v467_v25 = vld [vmem:[%s3687_s27 + $0xe0] sm:$0xff]  ;;  %1607 = vmatpush1.bf16.msra.mxu0 %v3052_v28 }
  0x27   : > { %v591_v26 = vld [vmem:[%s3687_s27 + $0x4c0] sm:$0xff]  ;;  %v3061_v30 = vcombine.high %v463_v24, %v467_v25  ;;  %1647 = vmatprep.subr.bf16.mxu1 %v3181_v23  ;;  %v3060_v36 = vcombine.low %v463_v24, %v467_v25  ;;  %v460_v23 = vld [vmem:[%s3687_s27 + $0xa8] sm:$0xff]  ;;  %v3046_v25 = vcombine.low %v448_v13, %v452_v14 }
  0x28   : > { %v595_v27 = vld [vmem:[%s3687_s27 + $0x4e0] sm:$0xff]  ;;  %1648 = vmatpush1.bf16.msra.mxu1 %v3180_v29 }
  0x29   : > { %v3189_v31 = vcombine.high %v591_v26, %v595_v27  ;;  %v471_v32 = vld [vmem:[%s3687_s27 + $0x100] sm:$0xff]  ;;  %1608 = vmatprep.subr.bf16.mxu0 %v3061_v30  ;;  %v3188_v37 = vcombine.low %v591_v26, %v595_v27  ;;  %v3055_v27 = vcombine.high %v456_v22, %v460_v23  ;;  %v464_v30 = vld [vmem:[%s3687_s27 + $0xc8] sm:$0xff] }
  0x2a   : > { %v475_v33 = vld [vmem:[%s3687_s27 + $0x120] sm:$0xff]  ;;  %1609 = vmatpush1.bf16.msra.mxu0 %v3060_v36 }
  0x2b   : > { %v599_v34 = vld [vmem:[%s3687_s27 + $0x500] sm:$0xff]  ;;  %v3069_v38 = vcombine.high %v471_v32, %v475_v33  ;;  %1649 = vmatprep.subr.bf16.mxu1 %v3189_v31  ;;  %v3068_v44 = vcombine.low %v471_v32, %v475_v33  ;;  %v468_v31 = vld [vmem:[%s3687_s27 + $0xe8] sm:$0xff]  ;;  %v3054_v33 = vcombine.low %v456_v22, %v460_v23 }
  0x2c   : > { %v603_v35 = vld [vmem:[%s3687_s27 + $0x520] sm:$0xff]  ;;  %1650 = vmatpush1.bf16.msra.mxu1 %v3188_v37 }
  0x2d   : > { %v3197_v39 = vcombine.high %v599_v34, %v603_v35  ;;  %v479_v40 = vld [vmem:[%s3687_s27 + $0x140] sm:$0xff]  ;;  %1610 = vmatprep.subr.bf16.mxu0 %v3069_v38  ;;  %v3196_v45 = vcombine.low %v599_v34, %v603_v35  ;;  %v3063_v35 = vcombine.high %v464_v30, %v468_v31  ;;  %v472_v38 = vld [vmem:[%s3687_s27 + $0x108] sm:$0xff] }
  0x2e   : > { %v483_v41 = vld [vmem:[%s3687_s27 + $0x160] sm:$0xff]  ;;  %1611 = vmatpush1.bf16.msra.mxu0 %v3068_v44 }
  0x2f   : > { %v607_v42 = vld [vmem:[%s3687_s27 + $0x540] sm:$0xff]  ;;  %v3077_v46 = vcombine.high %v479_v40, %v483_v41  ;;  %1651 = vmatprep.subr.bf16.mxu1 %v3197_v39  ;;  %v3076_v52 = vcombine.low %v479_v40, %v483_v41  ;;  %v476_v39 = vld [vmem:[%s3687_s27 + $0x128] sm:$0xff]  ;;  %v3062_v41 = vcombine.low %v464_v30, %v468_v31 }
  0x30   : > { %v611_v43 = vld [vmem:[%s3687_s27 + $0x560] sm:$0xff]  ;;  %1652 = vmatpush1.bf16.msra.mxu1 %v3196_v45 }
  0x31   : > { %v3205_v47 = vcombine.high %v607_v42, %v611_v43  ;;  %v487_v48 = vld [vmem:[%s3687_s27 + $0x180] sm:$0xff]  ;;  %1612 = vmatprep.subr.bf16.mxu0 %v3077_v46  ;;  %v3204_v53 = vcombine.low %v607_v42, %v611_v43  ;;  %v3071_v43 = vcombine.high %v472_v38, %v476_v39  ;;  %v480_v46 = vld [vmem:[%s3687_s27 + $0x148] sm:$0xff] }
  0x32   : > { %v491_v49 = vld [vmem:[%s3687_s27 + $0x1a0] sm:$0xff]  ;;  %1613 = vmatpush1.bf16.msra.mxu0 %v3076_v52 }
  0x33   : > { %v615_v50 = vld [vmem:[%s3687_s27 + $0x580] sm:$0xff]  ;;  %v3085_v54 = vcombine.high %v487_v48, %v491_v49  ;;  %1653 = vmatprep.subr.bf16.mxu1 %v3205_v47  ;;  %v3084_v62 = vcombine.low %v487_v48, %v491_v49  ;;  %v484_v47 = vld [vmem:[%s3687_s27 + $0x168] sm:$0xff]  ;;  %v3070_v49 = vcombine.low %v472_v38, %v476_v39 }
  0x34   : > { %v619_v51 = vld [vmem:[%s3687_s27 + $0x5a0] sm:$0xff]  ;;  %1654 = vmatpush1.bf16.msra.mxu1 %v3204_v53 }
  0x35   : > { %v3213_v55 = vcombine.high %v615_v50, %v619_v51  ;;  %v495_v56 = vld [vmem:[%s3687_s27 + $0x1c0] sm:$0xff]  ;;  %1614 = vmatprep.subr.bf16.mxu0 %v3085_v54  ;;  %v3212_v63 = vcombine.low %v615_v50, %v619_v51  ;;  %v3079_v51 = vcombine.high %v480_v46, %v484_v47  ;;  %v488_v54 = vld [vmem:[%s3687_s27 + $0x188] sm:$0xff] }
  0x36   : > { %v499_v57 = vld [vmem:[%s3687_s27 + $0x1e0] sm:$0xff]  ;;  %1615 = vmatpush1.bf16.msra.mxu0 %v3084_v62 }
  0x37   : > { %v3722_v58 = vld [vmem:[%s3682_s23] sm:$0xff]  ;;  %v3093_v0 = vcombine.high %v495_v56, %v499_v57  ;;  %1655 = vmatprep.subr.bf16.mxu1 %v3213_v55  ;;  %v3092_v6 = vcombine.low %v495_v56, %v499_v57  ;;  %v492_v55 = vld [vmem:[%s3687_s27 + $0x1a8] sm:$0xff]  ;;  %v3078_v57 = vcombine.low %v480_v46, %v484_v47 }
  0x38   : > { %v623_v59 = vld [vmem:[%s3687_s27 + $0x5c0] sm:$0xff]  ;;  %v3728_v61 = vcombine.high %v3722_v58, %v3722_v58  ;;  %1656 = vmatpush1.bf16.msra.mxu1 %v3212_v63 }
  0x39   : > { %v627_v60 = vld [vmem:[%s3687_s27 + $0x5e0] sm:$0xff]  ;;  %1616 = vmatprep.subr.bf16.mxu0 %v3093_v0  ;;  %v496_v0 = vld [vmem:[%s3687_s27 + $0x1c8] sm:$0xff] }
  0x3a   : > { %v3221_v1 = vcombine.high %v623_v59, %v627_v60  ;;  %v503_v2 = vld [vmem:[%s3687_s27 + $0x200] sm:$0xff]  ;;  %1634 = vmatprep.mubr.bf16.mxu0 %v3728_v61  ;;  %v3220_v7 = vcombine.low %v623_v59, %v627_v60  ;;  %1617 = vmatpush1.bf16.msra.mxu0 %v3092_v6  ;;  %v3087_v60 = vcombine.high %v488_v54, %v492_v55  ;;  %v568_v6 = vld [vmem:[%s3687_s27 + $0x408] sm:$0xff] }
  0x3b   : > { %v507_v3 = vld [vmem:[%s3687_s27 + $0x220] sm:$0xff] }
  0x3c   : > { %v3101_v8 = vcombine.high %v503_v2, %v507_v3  ;;  %1657 = vmatprep.subr.bf16.mxu1 %v3221_v1  ;;  %v511_v11 = vld [vmem:[%s3687_s27 + $0x240] sm:$0xff]  ;;  %v3100_v16 = vcombine.low %v503_v2, %v507_v3  ;;  %v500_v1 = vld [vmem:[%s3687_s27 + $0x1e8] sm:$0xff]  ;;  %v3086_v3 = vcombine.low %v488_v54, %v492_v55 }
  0x3d   : > { %v515_v12 = vld [vmem:[%s3687_s27 + $0x260] sm:$0xff]  ;;  %1658 = vmatpush1.bf16.msra.mxu1 %v3220_v7  ;;  %v3095_v5 = vcombine.high %v496_v0, %v500_v1  ;;  %v572_v7 = vld [vmem:[%s3687_s27 + $0x428] sm:$0xff] }
  0x3e   : > { %1618 = vmatprep.subr.bf16.mxu0 %v3101_v8  ;;  %v3109_v18 = vcombine.high %v511_v11, %v515_v12  ;;  %1684 = vmatprep.subr.bf16.mxu1 %v3039_v10  ;;  %v519_v20 = vld [vmem:[%s3687_s27 + $0x280] sm:$0xff]  ;;  %v3108_v24 = vcombine.low %v511_v11, %v515_v12  ;;  %v504_v8 = vld [vmem:[%s3687_s27 + $0x208] sm:$0xff]  ;;  %v3094_v12 = vcombine.low %v496_v0, %v500_v1 }
  0x3f   : > { %v523_v21 = vld [vmem:[%s3687_s27 + $0x2a0] sm:$0xff]  ;;  %1619 = vmatpush1.bf16.msra.mxu0 %v3100_v16  ;;  %v508_v10 = vld [vmem:[%s3687_s27 + $0x228] sm:$0xff]  ;;  %v3167_v13 = vcombine.high %v568_v6, %v572_v7 }
  0x40   : > { %1676 = vmatmul.mubr.bf16.vlgmr.msra.gmra.mrb[0].mxu1 %v3740_v15  ;;  %1620 = vmatprep.subr.bf16.mxu0 %v3109_v18  ;;  %v3117_v26 = vcombine.high %v519_v20, %v523_v21  ;;  %v527_v28 = vld [vmem:[%s3687_s27 + $0x2c0] sm:$0xff]  ;;  %v3116_v32 = vcombine.low %v519_v20, %v523_v21  ;;  %v3103_v14 = vcombine.high %v504_v8, %v508_v10  ;;  %v576_v16 = vld [vmem:[%s3687_s27 + $0x448] sm:$0xff] }
  0x41   : > { %1685 = vmatpush1.bf16.msra.mxu1 %v3038_v17  ;;  %v531_v29 = vld [vmem:[%s3687_s27 + $0x2e0] sm:$0xff]  ;;  %1716 = vmatprep.mubr.bf16.mxu1 %v3728_v61  ;;  %v580_v17 = vld [vmem:[%s3687_s27 + $0x468] sm:$0xff]  ;;  %v3776_v18 = vcombine.low %v3722_v58, %v3722_v58  ;;  %v3166_v21 = vcombine.low %v568_v6, %v572_v7  ;;  %v3102_v22 = vcombine.low %v504_v8, %v508_v10 }
  0x42   : > { %1686 = vmatprep.subr.bf16.mxu1 %v3047_v19  ;;  %v3125_v34 = vcombine.high %v527_v28, %v531_v29  ;;  %v535_v36 = vld [vmem:[%s3687_s27 + $0x300] sm:$0xff]  ;;  %v3124_v40 = vcombine.low %v527_v28, %v531_v29  ;;  %v512_v19 = vld [vmem:[%s3687_s27 + $0x248] sm:$0xff]  ;;  %v3175_v23 = vcombine.high %v576_v16, %v580_v17  ;;  %v3174_v28 = vcombine.low %v576_v16, %v580_v17 }
  0x43   : > { %1621 = vmatpush1.bf16.msra.mxu0 %v3108_v24  ;;  %v539_v37 = vld [vmem:[%s3687_s27 + $0x320] sm:$0xff]  ;;  %v516_v20 = vld [vmem:[%s3687_s27 + $0x268] sm:$0xff] }
  0x44   : > { %1622 = vmatprep.subr.bf16.mxu0 %v3117_v26  ;;  %v3133_v42 = vcombine.high %v535_v36, %v539_v37  ;;  %v543_v44 = vld [vmem:[%s3687_s27 + $0x340] sm:$0xff]  ;;  %v3132_v48 = vcombine.low %v535_v36, %v539_v37  ;;  %v3111_v24 = vcombine.high %v512_v19, %v516_v20  ;;  %v588_v26 = vld [vmem:[%s3687_s27 + $0x4a8] sm:$0xff]  ;;  %v3110_v29 = vcombine.low %v512_v19, %v516_v20 }
  0x45   : > { %1687 = vmatpush1.bf16.msra.mxu1 %v3046_v25  ;;  %v547_v45 = vld [vmem:[%s3687_s27 + $0x360] sm:$0xff]  ;;  %v584_v25 = vld [vmem:[%s3687_s27 + $0x488] sm:$0xff] }
  0x46   : > { %1688 = vmatprep.subr.bf16.mxu1 %v3055_v27  ;;  %v3141_v50 = vcombine.high %v543_v44, %v547_v45  ;;  %v551_v52 = vld [vmem:[%s3687_s27 + $0x380] sm:$0xff]  ;;  %v3140_v56 = vcombine.low %v543_v44, %v547_v45  ;;  %v520_v58 = vld [vmem:[%s3687_s27 + $0x288] sm:$0xff]  ;;  %v3183_v30 = vcombine.high %v584_v25, %v588_v26  ;;  %v3182_v36 = vcombine.low %v584_v25, %v588_v26 }
  0x47   : > { %1623 = vmatpush1.bf16.msra.mxu0 %v3116_v32  ;;  %v555_v53 = vld [vmem:[%s3687_s27 + $0x3a0] sm:$0xff]  ;;  %v524_v27 = vld [vmem:[%s3687_s27 + $0x2a8] sm:$0xff] }
  0x48   : > { %1624 = vmatprep.subr.bf16.mxu0 %v3125_v34  ;;  %v3149_v59 = vcombine.high %v551_v52, %v555_v53  ;;  %v559_v62 = vld [vmem:[%s3687_s27 + $0x3c0] sm:$0xff]  ;;  %v3148_v2 = vcombine.low %v551_v52, %v555_v53  ;;  %v3119_v31 = vcombine.high %v520_v58, %v524_v27  ;;  %v592_v32 = vld [vmem:[%s3687_s27 + $0x4c8] sm:$0xff]  ;;  %v3118_v37 = vcombine.low %v520_v58, %v524_v27 }
  0x49   : > { %1689 = vmatpush1.bf16.msra.mxu1 %v3054_v33  ;;  %v563_v63 = vld [vmem:[%s3687_s27 + $0x3e0] sm:$0xff]  ;;  %v596_v33 = vld [vmem:[%s3687_s27 + $0x4e8] sm:$0xff] }
  0x4a   : > { %1690 = vmatprep.subr.bf16.mxu1 %v3063_v35  ;;  %v3157_v4 = vcombine.high %v559_v62, %v563_v63  ;;  %v3156_v11 = vcombine.low %v559_v62, %v563_v63  ;;  %v528_v34 = vld [vmem:[%s3687_s27 + $0x2c8] sm:$0xff]  ;;  %v3191_v38 = vcombine.high %v592_v32, %v596_v33  ;;  %v3190_v44 = vcombine.low %v592_v32, %v596_v33 }
  0x4b   : > { %1625 = vmatpush1.bf16.msra.mxu0 %v3124_v40  ;;  %v532_v35 = vld [vmem:[%s3687_s27 + $0x2e8] sm:$0xff] }
  0x4c   : > { %1626 = vmatprep.subr.bf16.mxu0 %v3133_v42  ;;  %v3127_v39 = vcombine.high %v528_v34, %v532_v35  ;;  %v600_v40 = vld [vmem:[%s3687_s27 + $0x508] sm:$0xff]  ;;  %v3126_v45 = vcombine.low %v528_v34, %v532_v35 }
  0x4d   : > { %1691 = vmatpush1.bf16.msra.mxu1 %v3062_v41  ;;  %v604_v41 = vld [vmem:[%s3687_s27 + $0x528] sm:$0xff] }
  0x4e   : > { %1692 = vmatprep.subr.bf16.mxu1 %v3071_v43  ;;  %v536_v42 = vld [vmem:[%s3687_s27 + $0x308] sm:$0xff]  ;;  %v3199_v46 = vcombine.high %v600_v40, %v604_v41  ;;  %v3198_v52 = vcombine.low %v600_v40, %v604_v41 }
  0x4f   : > { %1627 = vmatpush1.bf16.msra.mxu0 %v3132_v48  ;;  %v540_v43 = vld [vmem:[%s3687_s27 + $0x328] sm:$0xff] }
  0x50   : > { %1628 = vmatprep.subr.bf16.mxu0 %v3141_v50  ;;  %v3135_v47 = vcombine.high %v536_v42, %v540_v43  ;;  %v608_v48 = vld [vmem:[%s3687_s27 + $0x548] sm:$0xff]  ;;  %v3134_v53 = vcombine.low %v536_v42, %v540_v43 }
  0x51   : > { %1693 = vmatpush1.bf16.msra.mxu1 %v3070_v49  ;;  %v612_v49 = vld [vmem:[%s3687_s27 + $0x568] sm:$0xff] }
  0x52   : > { %1694 = vmatprep.subr.bf16.mxu1 %v3079_v51  ;;  %v544_v50 = vld [vmem:[%s3687_s27 + $0x348] sm:$0xff]  ;;  %v3207_v54 = vcombine.high %v608_v48, %v612_v49  ;;  %v3206_v62 = vcombine.low %v608_v48, %v612_v49 }
  0x53   : > { %1629 = vmatpush1.bf16.msra.mxu0 %v3140_v56  ;;  %v548_v51 = vld [vmem:[%s3687_s27 + $0x368] sm:$0xff] }
  0x54   : > { %1630 = vmatprep.subr.bf16.mxu0 %v3149_v59  ;;  %v3143_v55 = vcombine.high %v544_v50, %v548_v51  ;;  %v616_v56 = vld [vmem:[%s3687_s27 + $0x588] sm:$0xff]  ;;  %v3142_v63 = vcombine.low %v544_v50, %v548_v51 }
  0x55   : > { %1695 = vmatpush1.bf16.msra.mxu1 %v3078_v57  ;;  %v620_v57 = vld [vmem:[%s3687_s27 + $0x5a8] sm:$0xff] }
  0x56   : > { %1696 = vmatprep.subr.bf16.mxu1 %v3087_v60  ;;  %v552_v59 = vld [vmem:[%s3687_s27 + $0x388] sm:$0xff]  ;;  %v3215_v0 = vcombine.high %v616_v56, %v620_v57  ;;  %v3214_v6 = vcombine.low %v616_v56, %v620_v57 }
  0x57   : > { %1631 = vmatpush1.bf16.msra.mxu0 %v3148_v2  ;;  %v556_v60 = vld [vmem:[%s3687_s27 + $0x3a8] sm:$0xff] }
  0x58   : > { %1632 = vmatprep.subr.bf16.mxu0 %v3157_v4  ;;  %v3151_v1 = vcombine.high %v552_v59, %v556_v60  ;;  %v624_v2 = vld [vmem:[%s3687_s27 + $0x5c8] sm:$0xff]  ;;  %v3150_v7 = vcombine.low %v552_v59, %v556_v60 }
  0x59   : > { %1697 = vmatpush1.bf16.msra.mxu1 %v3086_v3  ;;  %v628_v3 = vld [vmem:[%s3687_s27 + $0x5e8] sm:$0xff] }
  0x5a   : > { %1698 = vmatprep.subr.bf16.mxu1 %v3095_v5  ;;  %v560_v4 = vld [vmem:[%s3687_s27 + $0x3c8] sm:$0xff]  ;;  %v3223_v8 = vcombine.high %v624_v2, %v628_v3  ;;  %v3222_v16 = vcombine.low %v624_v2, %v628_v3 }
  0x5b   : > { %1633 = vmatpush1.bf16.msra.mxu0 %v3156_v11  ;;  %v564_v5 = vld [vmem:[%s3687_s27 + $0x3e8] sm:$0xff]  ;;  %v441_v11 = vld [vmem:[%s3687_s27 + $0x10] sm:$0xff] }
  0x5c   : > { %1725 = vmatprep.subr.bf16.mxu0 %v3167_v13  ;;  %v3159_v10 = vcombine.high %v560_v4, %v564_v5  ;;  %v569_v13 = vld [vmem:[%s3687_s27 + $0x410] sm:$0xff]  ;;  %v3158_v17 = vcombine.low %v560_v4, %v564_v5 }
  0x5d   : > { %1699 = vmatpush1.bf16.msra.mxu1 %v3094_v12  ;;  %v445_v12 = vld [vmem:[%s3687_s27 + $0x30] sm:$0xff] }
  0x5e   : > { %1700 = vmatprep.subr.bf16.mxu1 %v3103_v14  ;;  %1635 = vmatmul.mubr.bf16.vlgmr.msra.gmra.mrb[0].mxu0 %v3776_v18  ;;  %v573_v14 = vld [vmem:[%s3687_s27 + $0x430] sm:$0xff]  ;;  %v3041_v19 = vcombine.high %v441_v11, %v445_v12  ;;  %v3040_v25 = vcombine.low %v441_v11, %v445_v12 }
  0x5f   : > { %1726 = vmatpush1.bf16.msra.mxu0 %v3166_v21  ;;  %1757 = vmatprep.mubr.bf16.mxu0 %v3596_v9  ;;  %v3169_v20 = vcombine.high %v569_v13, %v573_v14  ;;  %v449_v21 = vld [vmem:[%s3687_s27 + $0x50] sm:$0xff]  ;;  %v3168_v26 = vcombine.low %v569_v13, %v573_v14 }
  0x60   : > { %1727 = vmatprep.subr.bf16.mxu0 %v3175_v23  ;;  %v577_v23 = vld [vmem:[%s3687_s27 + $0x450] sm:$0xff] }
  0x61   : > { %1701 = vmatpush1.bf16.msra.mxu1 %v3102_v22  ;;  %v453_v22 = vld [vmem:[%s3687_s27 + $0x70] sm:$0xff] }
  0x62   : > { %1702 = vmatprep.subr.bf16.mxu1 %v3111_v24  ;;  %v581_v24 = vld [vmem:[%s3687_s27 + $0x470] sm:$0xff]  ;;  %v3049_v58 = vcombine.high %v449_v21, %v453_v22  ;;  %v3048_v32 = vcombine.low %v449_v21, %v453_v22 }
  0x63   : > { %1728 = vmatpush1.bf16.msra.mxu0 %v3174_v28  ;;  %v3177_v27 = vcombine.high %v577_v23, %v581_v24  ;;  %v457_v28 = vld [vmem:[%s3687_s27 + $0x90] sm:$0xff]  ;;  %v3176_v33 = vcombine.low %v577_v23, %v581_v24 }
  0x64   : > { %1729 = vmatprep.subr.bf16.mxu0 %v3183_v30  ;;  %v585_v30 = vld [vmem:[%s3687_s27 + $0x490] sm:$0xff] }
  0x65   : > { %1703 = vmatpush1.bf16.msra.mxu1 %v3110_v29  ;;  %v461_v29 = vld [vmem:[%s3687_s27 + $0xb0] sm:$0xff] }
  0x66   : > { %1704 = vmatprep.subr.bf16.mxu1 %v3119_v31  ;;  %v589_v31 = vld [vmem:[%s3687_s27 + $0x4b0] sm:$0xff]  ;;  %v3057_v34 = vcombine.high %v457_v28, %v461_v29  ;;  %v3056_v40 = vcombine.low %v457_v28, %v461_v29 }
  0x67   : > { %1730 = vmatpush1.bf16.msra.mxu0 %v3182_v36  ;;  %v3185_v35 = vcombine.high %v585_v30, %v589_v31  ;;  %v465_v36 = vld [vmem:[%s3687_s27 + $0xd0] sm:$0xff]  ;;  %v3184_v41 = vcombine.low %v585_v30, %v589_v31 }
  0x68   : > { %1731 = vmatprep.subr.bf16.mxu0 %v3191_v38  ;;  %v593_v38 = vld [vmem:[%s3687_s27 + $0x4d0] sm:$0xff] }
  0x69   : > { %1705 = vmatpush1.bf16.msra.mxu1 %v3118_v37  ;;  %v469_v37 = vld [vmem:[%s3687_s27 + $0xf0] sm:$0xff] }
  0x6a   : > { %1706 = vmatprep.subr.bf16.mxu1 %v3127_v39  ;;  %v597_v39 = vld [vmem:[%s3687_s27 + $0x4f0] sm:$0xff]  ;;  %v3065_v42 = vcombine.high %v465_v36, %v469_v37  ;;  %v3064_v48 = vcombine.low %v465_v36, %v469_v37 }
  0x6b   : > { %1732 = vmatpush1.bf16.msra.mxu0 %v3190_v44  ;;  %v3193_v43 = vcombine.high %v593_v38, %v597_v39  ;;  %v473_v44 = vld [vmem:[%s3687_s27 + $0x110] sm:$0xff]  ;;  %v3192_v49 = vcombine.low %v593_v38, %v597_v39 }
  0x6c   : > { %1733 = vmatprep.subr.bf16.mxu0 %v3199_v46  ;;  %v601_v46 = vld [vmem:[%s3687_s27 + $0x510] sm:$0xff] }
  0x6d   : > { %1707 = vmatpush1.bf16.msra.mxu1 %v3126_v45  ;;  %v477_v45 = vld [vmem:[%s3687_s27 + $0x130] sm:$0xff] }
  0x6e   : > { %1708 = vmatprep.subr.bf16.mxu1 %v3135_v47  ;;  %v605_v47 = vld [vmem:[%s3687_s27 + $0x530] sm:$0xff]  ;;  %v3073_v50 = vcombine.high %v473_v44, %v477_v45  ;;  %v3072_v56 = vcombine.low %v473_v44, %v477_v45 }
  0x6f   : > { %1734 = vmatpush1.bf16.msra.mxu0 %v3198_v52  ;;  %v3201_v51 = vcombine.high %v601_v46, %v605_v47  ;;  %v481_v52 = vld [vmem:[%s3687_s27 + $0x150] sm:$0xff]  ;;  %v3200_v57 = vcombine.low %v601_v46, %v605_v47 }
  0x70   : > { %1735 = vmatprep.subr.bf16.mxu0 %v3207_v54  ;;  %v609_v54 = vld [vmem:[%s3687_s27 + $0x550] sm:$0xff] }
  0x71   : > { %1709 = vmatpush1.bf16.msra.mxu1 %v3134_v53  ;;  %v485_v53 = vld [vmem:[%s3687_s27 + $0x170] sm:$0xff] }
  0x72   : > { %1710 = vmatprep.subr.bf16.mxu1 %v3143_v55  ;;  %v613_v55 = vld [vmem:[%s3687_s27 + $0x570] sm:$0xff]  ;;  %v3081_v59 = vcombine.high %v481_v52, %v485_v53  ;;  %v3080_v2 = vcombine.low %v481_v52, %v485_v53 }
  0x73   : > { %1736 = vmatpush1.bf16.msra.mxu0 %v3206_v62  ;;  %v3209_v60 = vcombine.high %v609_v54, %v613_v55  ;;  %v489_v62 = vld [vmem:[%s3687_s27 + $0x190] sm:$0xff]  ;;  %v3208_v3 = vcombine.low %v609_v54, %v613_v55 }
  0x74   : > { %1737 = vmatprep.subr.bf16.mxu0 %v3215_v0  ;;  %v617_v0 = vld [vmem:[%s3687_s27 + $0x590] sm:$0xff] }
  0x75   : > { %1711 = vmatpush1.bf16.msra.mxu1 %v3142_v63  ;;  %v493_v63 = vld [vmem:[%s3687_s27 + $0x1b0] sm:$0xff] }
  0x76   : > { %1712 = vmatprep.subr.bf16.mxu1 %v3151_v1  ;;  %v621_v1 = vld [vmem:[%s3687_s27 + $0x5b0] sm:$0xff]  ;;  %v3089_v4 = vcombine.high %v489_v62, %v493_v63  ;;  %v3088_v11 = vcombine.low %v489_v62, %v493_v63 }
  0x77   : > { %1738 = vmatpush1.bf16.msra.mxu0 %v3214_v6  ;;  %v3217_v5 = vcombine.high %v617_v0, %v621_v1  ;;  %v497_v6 = vld [vmem:[%s3687_s27 + $0x1d0] sm:$0xff]  ;;  %v3216_v12 = vcombine.low %v617_v0, %v621_v1 }
  0x78   : > { %1739 = vmatprep.subr.bf16.mxu0 %v3223_v8  ;;  %v625_v8 = vld [vmem:[%s3687_s27 + $0x5d0] sm:$0xff] }
  0x79   : > { %1713 = vmatpush1.bf16.msra.mxu1 %v3150_v7  ;;  %v501_v7 = vld [vmem:[%s3687_s27 + $0x1f0] sm:$0xff] }
  0x7a   : > { %1714 = vmatprep.subr.bf16.mxu1 %v3159_v10  ;;  %v629_v10 = vld [vmem:[%s3687_s27 + $0x5f0] sm:$0xff]  ;;  %v3097_v13 = vcombine.high %v497_v6, %v501_v7  ;;  %v3096_v21 = vcombine.low %v497_v6, %v501_v7 }
  0x7b   : > { %1740 = vmatpush1.bf16.msra.mxu0 %v3222_v16  ;;  %v3225_v14 = vcombine.high %v625_v8, %v629_v10  ;;  %v505_v16 = vld [vmem:[%s3687_s27 + $0x210] sm:$0xff]  ;;  %v3224_v22 = vcombine.low %v625_v8, %v629_v10 }
  0x7c   : > { %1766 = vmatprep.subr.bf16.mxu0 %v3041_v19  ;;  %v442_v19 = vld [vmem:[%s3687_s27 + $0x18] sm:$0xff]  ;;  %v545_v55 = vld [vmem:[%s3687_s27 + $0x350] sm:$0xff] }
  0x7d   : > { %1715 = vmatpush1.bf16.msra.mxu1 %v3158_v17  ;;  %v509_v17 = vld [vmem:[%s3687_s27 + $0x230] sm:$0xff] }
  0x7e   : > { %1807 = vmatprep.subr.bf16.mxu1 %v3169_v20  ;;  %1758 = vmatmul.mubr.bf16.vlgmr.msra.gmra.mrb[4].mxu0 %v3740_v15  ;;  %v446_v20 = vld [vmem:[%s3687_s27 + $0x38] sm:$0xff]  ;;  %v3105_v23 = vcombine.high %v505_v16, %v509_v17  ;;  %v3104_v28 = vcombine.low %v505_v16, %v509_v17  ;;  %v553_v1 = vld [vmem:[%s3687_s27 + $0x390] sm:$0xff] }
  0x7f   : > { %1767 = vmatpush1.bf16.msra.mxu0 %v3040_v25  ;;  %1798 = vmatprep.mubr.bf16.mxu0 %v3728_v61  ;;  %v3043_v24 = vcombine.high %v442_v19, %v446_v20  ;;  %v513_v25 = vld [vmem:[%s3687_s27 + $0x250] sm:$0xff]  ;;  %v3042_v29 = vcombine.low %v442_v19, %v446_v20  ;;  %v570_v20 = vld [vmem:[%s3687_s27 + $0x418] sm:$0xff] }
  0x80   : > { %1717 = vmatmul.mubr.bf16.vlgmr.msra.gmra.mrb[4].mxu1 %v3776_v18  ;;  %1768 = vmatprep.subr.bf16.mxu0 %v3049_v58  ;;  %v450_v58 = vld [vmem:[%s3687_s27 + $0x58] sm:$0xff]  ;;  %v561_v10 = vld [vmem:[%s3687_s27 + $0x3d0] sm:$0xff] }
  0x81   : > { %1808 = vmatpush1.bf16.msra.mxu1 %v3168_v26  ;;  %1839 = vmatprep.mubr.bf16.mxu1 %v3596_v9  ;;  %v517_v26 = vld [vmem:[%s3687_s27 + $0x270] sm:$0xff] }
  0x82   : > { %1809 = vmatprep.subr.bf16.mxu1 %v3177_v27  ;;  %v454_v27 = vld [vmem:[%s3687_s27 + $0x78] sm:$0xff]  ;;  %v3113_v30 = vcombine.high %v513_v25, %v517_v26  ;;  %v3112_v36 = vcombine.low %v513_v25, %v517_v26 }
  0x83   : > { %1769 = vmatpush1.bf16.msra.mxu0 %v3048_v32  ;;  %v3051_v31 = vcombine.high %v450_v58, %v454_v27  ;;  %v521_v32 = vld [vmem:[%s3687_s27 + $0x290] sm:$0xff]  ;;  %v3050_v37 = vcombine.low %v450_v58, %v454_v27  ;;  %v578_v27 = vld [vmem:[%s3687_s27 + $0x458] sm:$0xff] }
  0x84   : > { %1770 = vmatprep.subr.bf16.mxu0 %v3057_v34  ;;  %v458_v34 = vld [vmem:[%s3687_s27 + $0x98] sm:$0xff] }
  0x85   : > { %1810 = vmatpush1.bf16.msra.mxu1 %v3176_v33  ;;  %v525_v33 = vld [vmem:[%s3687_s27 + $0x2b0] sm:$0xff] }
  0x86   : > { %1811 = vmatprep.subr.bf16.mxu1 %v3185_v35  ;;  %v462_v35 = vld [vmem:[%s3687_s27 + $0xb8] sm:$0xff]  ;;  %v3121_v38 = vcombine.high %v521_v32, %v525_v33  ;;  %v3120_v44 = vcombine.low %v521_v32, %v525_v33 }
  0x87   : > { %1771 = vmatpush1.bf16.msra.mxu0 %v3056_v40  ;;  %v3059_v39 = vcombine.high %v458_v34, %v462_v35  ;;  %v529_v40 = vld [vmem:[%s3687_s27 + $0x2d0] sm:$0xff]  ;;  %v3058_v45 = vcombine.low %v458_v34, %v462_v35  ;;  %v586_v35 = vld [vmem:[%s3687_s27 + $0x498] sm:$0xff] }
  0x88   : > { %1772 = vmatprep.subr.bf16.mxu0 %v3065_v42  ;;  %v466_v42 = vld [vmem:[%s3687_s27 + $0xd8] sm:$0xff] }
  0x89   : > { %1812 = vmatpush1.bf16.msra.mxu1 %v3184_v41  ;;  %v533_v41 = vld [vmem:[%s3687_s27 + $0x2f0] sm:$0xff] }
  0x8a   : > { %1813 = vmatprep.subr.bf16.mxu1 %v3193_v43  ;;  %v470_v43 = vld [vmem:[%s3687_s27 + $0xf8] sm:$0xff]  ;;  %v3129_v46 = vcombine.high %v529_v40, %v533_v41 }
  0x8b   : > { %1773 = vmatpush1.bf16.msra.mxu0 %v3064_v48  ;;  %v3067_v47 = vcombine.high %v466_v42, %v470_v43  ;;  %v537_v48 = vld [vmem:[%s3687_s27 + $0x310] sm:$0xff]  ;;  %v3066_v52 = vcombine.low %v466_v42, %v470_v43  ;;  %v594_v43 = vld [vmem:[%s3687_s27 + $0x4d8] sm:$0xff] }
  0x8c   : > { %1774 = vmatprep.subr.bf16.mxu0 %v3073_v50  ;;  %v474_v50 = vld [vmem:[%s3687_s27 + $0x118] sm:$0xff] }
  0x8d   : > { %1814 = vmatpush1.bf16.msra.mxu1 %v3192_v49  ;;  %v541_v49 = vld [vmem:[%s3687_s27 + $0x330] sm:$0xff] }
  0x8e   : > { %1815 = vmatprep.subr.bf16.mxu1 %v3201_v51  ;;  %v478_v51 = vld [vmem:[%s3687_s27 + $0x138] sm:$0xff]  ;;  %v3137_v53 = vcombine.high %v537_v48, %v541_v49 }
  0x8f   : > { %1775 = vmatpush1.bf16.msra.mxu0 %v3072_v56  ;;  %v3075_v54 = vcombine.high %v474_v50, %v478_v51  ;;  %v549_v56 = vld [vmem:[%s3687_s27 + $0x370] sm:$0xff]  ;;  %v3074_v62 = vcombine.low %v474_v50, %v478_v51  ;;  %v602_v50 = vld [vmem:[%s3687_s27 + $0x518] sm:$0xff] }
  0x90   : > { %1776 = vmatprep.subr.bf16.mxu0 %v3081_v59  ;;  %v486_v59 = vld [vmem:[%s3687_s27 + $0x178] sm:$0xff]  ;;  %v3145_v63 = vcombine.high %v545_v55, %v549_v56 }
  0x91   : > { %1816 = vmatpush1.bf16.msra.mxu1 %v3200_v57  ;;  %v482_v57 = vld [vmem:[%s3687_s27 + $0x158] sm:$0xff] }
  0x92   : > { %1817 = vmatprep.subr.bf16.mxu1 %v3209_v60  ;;  %v3136_v60 = vcombine.low %v537_v48, %v541_v49  ;;  %v3083_v0 = vcombine.high %v482_v57, %v486_v59  ;;  %v3082_v6 = vcombine.low %v482_v57, %v486_v59  ;;  %v606_v51 = vld [vmem:[%s3687_s27 + $0x538] sm:$0xff] }
  0x93   : > { %1777 = vmatpush1.bf16.msra.mxu0 %v3080_v2  ;;  %v557_v2 = vld [vmem:[%s3687_s27 + $0x3b0] sm:$0xff]  ;;  %v610_v57 = vld [vmem:[%s3687_s27 + $0x558] sm:$0xff] }
  0x94   : > { %1778 = vmatprep.subr.bf16.mxu0 %v3089_v4  ;;  %v494_v4 = vld [vmem:[%s3687_s27 + $0x1b8] sm:$0xff]  ;;  %v3153_v7 = vcombine.high %v553_v1, %v557_v2 }
  0x95   : > { %1818 = vmatpush1.bf16.msra.mxu1 %v3208_v3  ;;  %v490_v3 = vld [vmem:[%s3687_s27 + $0x198] sm:$0xff] }
  0x96   : > { %1819 = vmatprep.subr.bf16.mxu1 %v3217_v5  ;;  %v3144_v5 = vcombine.low %v545_v55, %v549_v56  ;;  %v3091_v8 = vcombine.high %v490_v3, %v494_v4  ;;  %v3090_v16 = vcombine.low %v490_v3, %v494_v4  ;;  %v3203_v55 = vcombine.high %v602_v50, %v606_v51  ;;  %v614_v59 = vld [vmem:[%s3687_s27 + $0x578] sm:$0xff] }
  0x97   : > { %1779 = vmatpush1.bf16.msra.mxu0 %v3088_v11  ;;  %v565_v11 = vld [vmem:[%s3687_s27 + $0x3f0] sm:$0xff]  ;;  %v618_v3 = vld [vmem:[%s3687_s27 + $0x598] sm:$0xff] }
  0x98   : > { %1780 = vmatprep.subr.bf16.mxu0 %v3097_v13  ;;  %v502_v13 = vld [vmem:[%s3687_s27 + $0x1f8] sm:$0xff]  ;;  %v3161_v17 = vcombine.high %v561_v10, %v565_v11 }
  0x99   : > { %1820 = vmatpush1.bf16.msra.mxu1 %v3216_v12  ;;  %v498_v12 = vld [vmem:[%s3687_s27 + $0x1d8] sm:$0xff] }
  0x9a   : > { %1821 = vmatprep.subr.bf16.mxu1 %v3225_v14  ;;  %v3152_v14 = vcombine.low %v553_v1, %v557_v2  ;;  %v3099_v19 = vcombine.high %v498_v12, %v502_v13  ;;  %v3098_v25 = vcombine.low %v498_v12, %v502_v13  ;;  %v3211_v1 = vcombine.high %v610_v57, %v614_v59  ;;  %v622_v4 = vld [vmem:[%s3687_s27 + $0x5b8] sm:$0xff] }
  0x9b   : > { %1781 = vmatpush1.bf16.msra.mxu0 %v3096_v21  ;;  %v574_v21 = vld [vmem:[%s3687_s27 + $0x438] sm:$0xff] }
  0x9c   : > { %1782 = vmatprep.subr.bf16.mxu0 %v3105_v23  ;;  %v510_v23 = vld [vmem:[%s3687_s27 + $0x238] sm:$0xff]  ;;  %v3171_v26 = vcombine.high %v570_v20, %v574_v21 }
  0x9d   : > { %1822 = vmatpush1.bf16.msra.mxu1 %v3224_v22  ;;  %v506_v22 = vld [vmem:[%s3687_s27 + $0x218] sm:$0xff] }
  0x9e   : > { %1848 = vmatprep.subr.bf16.mxu1 %v3043_v24  ;;  %v3160_v24 = vcombine.low %v561_v10, %v565_v11  ;;  %v3107_v58 = vcombine.high %v506_v22, %v510_v23  ;;  %v3106_v32 = vcombine.low %v506_v22, %v510_v23  ;;  %v3219_v10 = vcombine.high %v618_v3, %v622_v4  ;;  %v626_v12 = vld [vmem:[%s3687_s27 + $0x5d8] sm:$0xff] }
  0x9f   : > { %1783 = vmatpush1.bf16.msra.mxu0 %v3104_v28  ;;  %v582_v28 = vld [vmem:[%s3687_s27 + $0x478] sm:$0xff] }
  0xa0   : > { %1840 = vmatmul.mubr.bf16.vlgmr.msra.gmra.mrb[8].mxu1 %v3740_v15  ;;  %1784 = vmatprep.subr.bf16.mxu0 %v3113_v30  ;;  %v518_v30 = vld [vmem:[%s3687_s27 + $0x278] sm:$0xff]  ;;  %v3179_v33 = vcombine.high %v578_v27, %v582_v28 }
  0xa1   : > { %1849 = vmatpush1.bf16.msra.mxu1 %v3042_v29  ;;  %1880 = vmatprep.mubr.bf16.mxu1 %v3728_v61  ;;  %v3128_v61 = vcombine.low %v529_v40, %v533_v41  ;;  %v514_v29 = vld [vmem:[%s3687_s27 + $0x258] sm:$0xff] }
  0xa2   : > { %1850 = vmatprep.subr.bf16.mxu1 %v3051_v31  ;;  %v3170_v31 = vcombine.low %v570_v20, %v574_v21  ;;  %v3115_v34 = vcombine.high %v514_v29, %v518_v30  ;;  %v3114_v40 = vcombine.low %v514_v29, %v518_v30  ;;  %v630_v13 = vld [vmem:[%s3687_s27 + $0x5f8] sm:$0xff]  ;;  %v430_v30 = vld [vmem:[#allocation2 + $0x8] sm:$0xff] }
  0xa3   : > { %1785 = vmatpush1.bf16.msra.mxu0 %v3112_v36  ;;  %v590_v36 = vld [vmem:[%s3687_s27 + $0x4b8] sm:$0xff]  ;;  %v3227_v20 = vcombine.high %v626_v12, %v630_v13  ;;  %v3226_v22 = vcombine.low %v626_v12, %v630_v13 }
  0xa4   : > { %1786 = vmatprep.subr.bf16.mxu0 %v3121_v38  ;;  %v526_v38 = vld [vmem:[%s3687_s27 + $0x2b8] sm:$0xff]  ;;  %v3187_v41 = vcombine.high %v586_v35, %v590_v36 }
  0xa5   : > { %1851 = vmatpush1.bf16.msra.mxu1 %v3050_v37  ;;  %v522_v37 = vld [vmem:[%s3687_s27 + $0x298] sm:$0xff] }
  0xa6   : > { %1852 = vmatprep.subr.bf16.mxu1 %v3059_v39  ;;  %v3178_v39 = vcombine.low %v578_v27, %v582_v28  ;;  %v3123_v42 = vcombine.high %v522_v37, %v526_v38  ;;  %v3122_v48 = vcombine.low %v522_v37, %v526_v38  ;;  %v429_v27 = vld [vmem:[#allocation2] sm:$0xff]  ;;  %v431_v38 = vld [vmem:[#allocation2 + $0x10] sm:$0xff] }
  0xa7   : > { %1787 = vmatpush1.bf16.msra.mxu0 %v3120_v44  ;;  %v598_v44 = vld [vmem:[%s3687_s27 + $0x4f8] sm:$0xff] }
  0xa8   : > { %1788 = vmatprep.subr.bf16.mxu0 %v3129_v46  ;;  %v534_v46 = vld [vmem:[%s3687_s27 + $0x2f8] sm:$0xff] }
  0xa9   : > { %1853 = vmatpush1.bf16.msra.mxu1 %v3058_v45  ;;  %v530_v45 = vld [vmem:[%s3687_s27 + $0x2d8] sm:$0xff] }
  0xaa   : > { %1854 = vmatprep.subr.bf16.mxu1 %v3067_v47  ;;  %v3186_v47 = vcombine.low %v586_v35, %v590_v36  ;;  %v3131_v49 = vcombine.high %v530_v45, %v534_v46 }
  0xab   : > { %1789 = vmatpush1.bf16.msra.mxu0 %v3128_v61  ;;  %v538_v61 = vld [vmem:[%s3687_s27 + $0x318] sm:$0xff] }
  0xac   : > { %1790 = vmatprep.subr.bf16.mxu0 %v3137_v53  ;;  %v3194_v53 = vcombine.low %v594_v43, %v598_v44 }
  0xad   : > { %1855 = vmatpush1.bf16.msra.mxu1 %v3066_v52  ;;  %v542_v52 = vld [vmem:[%s3687_s27 + $0x338] sm:$0xff] }
  0xae   : > { %1856 = vmatprep.subr.bf16.mxu1 %v3075_v54  ;;  %v3130_v54 = vcombine.low %v530_v45, %v534_v46  ;;  %v3139_v56 = vcombine.high %v538_v61, %v542_v52 }
  0xaf   : > { %1791 = vmatpush1.bf16.msra.mxu0 %v3136_v60  ;;  %v546_v60 = vld [vmem:[%s3687_s27 + $0x358] sm:$0xff] }
  0xb0   : > { %1792 = vmatprep.subr.bf16.mxu0 %v3145_v63  ;;  %v3202_v63 = vcombine.low %v602_v50, %v606_v51 }
  0xb1   : > { %1857 = vmatpush1.bf16.msra.mxu1 %v3074_v62  ;;  %v550_v62 = vld [vmem:[%s3687_s27 + $0x378] sm:$0xff] }
  0xb2   : > { %1858 = vmatprep.subr.bf16.mxu1 %v3083_v0  ;;  %v3138_v0 = vcombine.low %v538_v61, %v542_v52  ;;  %v3147_v2 = vcombine.high %v546_v60, %v550_v62  ;;  %v433_v61 = vld [vmem:[#allocation2 + $0x20] sm:$0xff] }
  0xb3   : > { %1793 = vmatpush1.bf16.msra.mxu0 %v3144_v5  ;;  %v554_v5 = vld [vmem:[%s3687_s27 + $0x398] sm:$0xff] }
  0xb4   : > { %1794 = vmatprep.subr.bf16.mxu0 %v3153_v7  ;;  %v3210_v7 = vcombine.low %v610_v57, %v614_v59 }
  0xb5   : > { %1859 = vmatpush1.bf16.msra.mxu1 %v3082_v6  ;;  %v558_v6 = vld [vmem:[%s3687_s27 + $0x3b8] sm:$0xff] }
  0xb6   : > { %1860 = vmatprep.subr.bf16.mxu1 %v3091_v8  ;;  %v3146_v8 = vcombine.low %v546_v60, %v550_v62  ;;  %v3155_v11 = vcombine.high %v554_v5, %v558_v6 }
  0xb7   : > { %1795 = vmatpush1.bf16.msra.mxu0 %v3152_v14  ;;  %v562_v14 = vld [vmem:[%s3687_s27 + $0x3d8] sm:$0xff] }
  0xb8   : > { %1796 = vmatprep.subr.bf16.mxu0 %v3161_v17  ;;  %v3218_v17 = vcombine.low %v618_v3, %v622_v4 }
  0xb9   : > { %1861 = vmatpush1.bf16.msra.mxu1 %v3090_v16  ;;  %v566_v16 = vld [vmem:[%s3687_s27 + $0x3f8] sm:$0xff] }
  0xba   : > { %1862 = vmatprep.subr.bf16.mxu1 %v3099_v19  ;;  %v3154_v19 = vcombine.low %v554_v5, %v558_v6  ;;  %v3163_v21 = vcombine.high %v562_v14, %v566_v16  ;;  %v3162_v23 = vcombine.low %v562_v14, %v566_v16  ;;  %v436_v5 = vld [vmem:[#allocation2 + $0x38] sm:$0xff]  ;;  %v3466_v14 = vld [vmem:[%s4244_s3 + $0x40] sm:$0xff] (!%p3228_p7)  }
  0xbb   : > { %1797 = vmatpush1.bf16.msra.mxu0 %v3160_v24  ;;  %v3467_v16 = vld [vmem:[%s4244_s3 + $0xc0] sm:$0xff] (!%p3228_p7)  }
  0xbc   : > { %1889 = vmatprep.subr.bf16.mxu0 %v3171_v26 }
  0xbd   : > { %1863 = vmatpush1.bf16.msra.mxu1 %v3098_v25 }
  0xbe   : > { %1864 = vmatprep.subr.bf16.mxu1 %v3107_v58  ;;  %1799 = vmatmul.mubr.bf16.vlgmr.msra.gmra.mrb[8].mxu0 %v3776_v18 }
  0xbf   : > { %1890 = vmatpush1.bf16.msra.mxu0 %v3170_v31  ;;  %1921 = vmatprep.mubr.bf16.mxu0 %v3596_v9  ;;  %v3195_v9 = vcombine.high %v594_v43, %v598_v44 }
  0xc0   : > { %1891 = vmatprep.subr.bf16.mxu0 %v3179_v33 }
  0xc1   : > { %1865 = vmatpush1.bf16.msra.mxu1 %v3106_v32 }
  0xc2   : > { %1866 = vmatprep.subr.bf16.mxu1 %v3115_v34 }
  0xc3   : > { %1892 = vmatpush1.bf16.msra.mxu0 %v3178_v39 }
  0xc4   : > { %1893 = vmatprep.subr.bf16.mxu0 %v3187_v41  ;;  %v432_v41 = vld [vmem:[#allocation2 + $0x18] sm:$0xff] }
  0xc5   : > { %1867 = vmatpush1.bf16.msra.mxu1 %v3114_v40 }
  0xc6   : > { %1868 = vmatprep.subr.bf16.mxu1 %v3123_v42 }
  0xc7   : > { %1894 = vmatpush1.bf16.msra.mxu0 %v3186_v47 }
  0xc8   : > { %1895 = vmatprep.subr.bf16.mxu0 %v3195_v9 }
  0xc9   : > { %1869 = vmatpush1.bf16.msra.mxu1 %v3122_v48 }
  0xca   : > { %1870 = vmatprep.subr.bf16.mxu1 %v3131_v49 }
  0xcb   : > { %1896 = vmatpush1.bf16.msra.mxu0 %v3194_v53 }
  0xcc   : > { %1897 = vmatprep.subr.bf16.mxu0 %v3203_v55 }
  0xcd   : > { %1871 = vmatpush1.bf16.msra.mxu1 %v3130_v54  ;;  %v434_v54 = vld [vmem:[#allocation2 + $0x28] sm:$0xff] }
  0xce   : > { %1872 = vmatprep.subr.bf16.mxu1 %v3139_v56 }
  0xcf   : > { %1898 = vmatpush1.bf16.msra.mxu0 %v3202_v63 }
  0xd0   : > { %1899 = vmatprep.subr.bf16.mxu0 %v3211_v1  ;;  %v435_v1 = vld [vmem:[#allocation2 + $0x30] sm:$0xff] }
  0xd1   : > { %1873 = vmatpush1.bf16.msra.mxu1 %v3138_v0 }
  0xd2   : > { %1874 = vmatprep.subr.bf16.mxu1 %v3147_v2 }
  0xd3   : > { %1900 = vmatpush1.bf16.msra.mxu0 %v3210_v7 }
  0xd4   : > { %1901 = vmatprep.subr.bf16.mxu0 %v3219_v10 }
  0xd5   : > { %1875 = vmatpush1.bf16.msra.mxu1 %v3146_v8 }
  0xd6   : > { %1876 = vmatprep.subr.bf16.mxu1 %v3155_v11 }
  0xd7   : > { %1902 = vmatpush1.bf16.msra.mxu0 %v3218_v17  ;;  %v3468_v17 = vld [vmem:[%s4244_s3] sm:$0xff] (!%p3228_p7)  }
  0xd8   : > { %1903 = vmatprep.subr.bf16.mxu0 %v3227_v20  ;;  %v3470_v20 = vld [vmem:[%s4244_s3 + $0x48] sm:$0xff] (!%p3228_p7)  }
  0xd9   : > { %1877 = vmatpush1.bf16.msra.mxu1 %v3154_v19  ;;  %v3469_v19 = vld [vmem:[%s4244_s3 + $0x80] sm:$0xff] (!%p3228_p7)  }
  0xda   : > { %1878 = vmatprep.subr.bf16.mxu1 %v3163_v21  ;;  %v3471_v21 = vld [vmem:[%s4244_s3 + $0xc8] sm:$0xff] (!%p3228_p7)  }
  0xdb   : > { %1904 = vmatpush1.bf16.msra.mxu0 %v3226_v22  ;;  %v3472_v22 = vld [vmem:[%s4244_s3 + $0x8] sm:$0xff] (!%p3228_p7)  }
  0xdc   : > { %3315 = vmatprep.subr.bf16.mxu0 (!%p3228_p7), %v3466_v14  ;;  %v3500_v14 = vld [vmem:[%s4244_s3 + $0x180] sm:$0xff] (!%p3228_p7)  }
  0xdd   : > { %1879 = vmatpush1.bf16.msra.mxu1 %v3162_v23  ;;  %v3473_v23 = vld [vmem:[%s4244_s3 + $0x88] sm:$0xff] (!%p3228_p7)  }
  0xde   : > { %1922 = vmatmul.mubr.bf16.vlgmr.msra.gmra.mrb[12].mxu0 %v3740_v15  ;;  %3337 = vmatprep.subr.bf16.mxu1 (!%p3228_p7), %v3467_v16 }
  0xdf   : > { %3316 = vmatpush3.bf16.msra.mxu0 (!%p3228_p7), %v3468_v17 }
  0xe0   : > { %1881 = vmatmul.mubr.bf16.vlgmr.msra.gmra.mrb[12].mxu1 %v3776_v18  ;;  %3317 = vmatprep.subr.bf16.mxu0 (!%p3228_p7), %v3470_v20  ;;  %v3502_v20 = vld [vmem:[%s4244_s3 + $0x108] sm:$0xff] (!%p3228_p7)  }
  0xe1   : > { %3338 = vmatpush3.bf16.msra.mxu1 (!%p3228_p7), %v3469_v19  ;;  %v3501_v19 = vld [vmem:[%s4244_s3 + $0x148] sm:$0xff] (!%p3228_p7)  }
  0xe2   : > { %3339 = vmatprep.subr.bf16.mxu1 (!%p3228_p7), %v3471_v21  ;;  %v3503_v21 = vld [vmem:[%s4244_s3 + $0x188] sm:$0xff] (!%p3228_p7)  }
  0xe3   : > { %3318 = vmatpush3.bf16.msra.mxu0 (!%p3228_p7), %v3472_v22  ;;  %v3504_v22 = vld [vmem:[%s4244_s3 + $0x150] sm:$0xff] (!%p3228_p7)  }
  0xe5   : > { %3340 = vmatpush3.bf16.msra.mxu1 (!%p3228_p7), %v3473_v23  ;;  %v3505_v23 = vld [vmem:[%s4244_s3 + $0x110] sm:$0xff] (!%p3228_p7)  }
 0x113   : > { %v1677_v24 = vpop.f32.mrb[0].mxu1 }
 0x114   : > { %v1679_v25 = vpop.f32.mrb[1].mxu1 }
 0x115   : > { %v1681_v26 = vpop.f32.mrb[2].mxu1 }
 0x116   : > { %v1682_v58 = vpop.f32.mrb[3].mxu1  ;;  %v3476_v26 = vld [vmem:[%s4244_s3 + $0x10] sm:$0xff] (!%p3228_p7)  }
 0x117   : > { %v3477_v58 = vld [vmem:[%s4244_s3 + $0x90] sm:$0xff] (!%p3228_p7)  }
 0x131   : > { %v1636_v28 = vpop.f32.mrb[0].mxu0 }
 0x132   : > { %v1678_v29 = vadd.f32 %v1677_v24, %v1636_v28  ;;  %v1638_v31 = vpop.f32.mrb[1].mxu0  ;;  %v3474_v24 = vld [vmem:[%s4244_s3 + $0x50] sm:$0xff] (!%p3228_p7)   ;;  %v3479_v28 = vld [vmem:[%s4244_s3 + $0xd8] sm:$0xff] (!%p3228_p7)  }
 0x133   : > { %v1680_v32 = vadd.f32 %v1679_v25, %v1638_v31  ;;  %v1640_v33 = vpop.f32.mrb[2].mxu0  ;;  %v3475_v25 = vld [vmem:[%s4244_s3 + $0xd0] sm:$0xff] (!%p3228_p7)   ;;  %3319 = vmatprep.subr.bf16.mxu0 (!%p3228_p7), %v3474_v24  ;;  %v3482_v31 = vld [vmem:[%s4244_s3 + $0x60] sm:$0xff] (!%p3228_p7)  }
 0x134   : > { %v1930_v34 = vadd.f32 %v1678_v29, %v429_v27  ;;  %v1641_v35 = vpop.f32.mrb[3].mxu0  ;;  %3341 = vmatprep.subr.bf16.mxu1 (!%p3228_p7), %v3475_v25  ;;  %3320 = vmatpush3.bf16.msra.mxu0 (!%p3228_p7), %v3476_v26  ;;  %v3478_v27 = vld [vmem:[%s4244_s3 + $0x58] sm:$0xff] (!%p3228_p7)   ;;  %v3484_v33 = vld [vmem:[%s4244_s3 + $0x20] sm:$0xff] (!%p3228_p7)   ;;  %v3506_v24 = vld [vmem:[%s4244_s3 + $0x190] sm:$0xff] (!%p3228_p7)  }
 0x135   : > { %v1931_v36 = vadd.f32 %v1680_v32, %v430_v30  ;;  %3342 = vmatpush3.bf16.msra.mxu1 (!%p3228_p7), %v3477_v58  ;;  %3321 = vmatprep.subr.bf16.mxu0 (!%p3228_p7), %v3478_v27  ;;  %v3480_v29 = vld [vmem:[%s4244_s3 + $0x18] sm:$0xff] (!%p3228_p7)   ;;  %v3483_v32 = vld [vmem:[%s4244_s3 + $0xe0] sm:$0xff] (!%p3228_p7)  }
 0x136   : > { %1938 = vst [vmem:[#allocation2] sm:$0xff] %v1930_v34  ;;  %3343 = vmatprep.subr.bf16.mxu1 (!%p3228_p7), %v3479_v28  ;;  %v3481_v30 = vld [vmem:[%s4244_s3 + $0x98] sm:$0xff] (!%p3228_p7)   ;;  %v1961_v34 = vlaneseq (!%p3228_p7)  ;;  %v3485_v35 = vld [vmem:[%s4244_s3 + $0xa0] sm:$0xff] (!%p3228_p7)  }
 0x137   : > { %1939 = vst [vmem:[#allocation2 + $0x8] sm:$0xff] %v1931_v36  ;;  %v3486_v36 = vld [vmem:[%s4244_s3 + $0x68] sm:$0xff] (!%p3228_p7)   ;;  %v3507_v25 = vld [vmem:[%s4244_s3 + $0x158] sm:$0xff] (!%p3228_p7)   ;;  %v3510_v28 = vld [vmem:[%s4244_s3 + $0x160] sm:$0xff] (!%p3228_p7)  }
 0x138   : > { %3322 = vmatpush3.bf16.msra.mxu0 (!%p3228_p7), %v3480_v29  ;;  %v3508_v26 = vld [vmem:[%s4244_s3 + $0x118] sm:$0xff] (!%p3228_p7)  }
 0x139   : > { %3344 = vmatpush3.bf16.msra.mxu1 (!%p3228_p7), %v3481_v30  ;;  %3323 = vmatprep.subr.bf16.mxu0 (!%p3228_p7), %v3482_v31  ;;  %v3509_v58 = vld [vmem:[%s4244_s3 + $0x198] sm:$0xff] (!%p3228_p7)   ;;  %v3511_v30 = vld [vmem:[%s4244_s3 + $0x120] sm:$0xff] (!%p3228_p7)  }
 0x13a   : > { %3345 = vmatprep.subr.bf16.mxu1 (!%p3228_p7), %v3483_v32  ;;  %v3512_v31 = vld [vmem:[%s4244_s3 + $0x1a0] sm:$0xff] (!%p3228_p7)  }
 0x13c   : > { %3324 = vmatpush3.bf16.msra.mxu0 (!%p3228_p7), %v3484_v33  ;;  %v3513_v33 = vld [vmem:[%s4244_s3 + $0x168] sm:$0xff] (!%p3228_p7)  }
 0x13d   : > { %3346 = vmatpush3.bf16.msra.mxu1 (!%p3228_p7), %v3485_v35  ;;  %3325 = vmatprep.subr.bf16.mxu0 (!%p3228_p7), %v3486_v36  ;;  %v3514_v35 = vld [vmem:[%s4244_s3 + $0x128] sm:$0xff] (!%p3228_p7)  }
 0x13e   : > { %v3515_v36 = vld [vmem:[%s4244_s3 + $0x1a8] sm:$0xff] (!%p3228_p7)  }
 0x151   : > { %v1759_v37 = vpop.f32.mrb[4].mxu0 }
 0x152   : > { %v1761_v18 = vpop.f32.mrb[5].mxu0 }
 0x153   : > { %v1718_v15 = vpop.f32.mrb[4].mxu1  ;;  %v1763_v42 = vpop.f32.mrb[6].mxu0 }
 0x154   : > { %v1760_v39 = vadd.f32 %v1759_v37, %v1718_v15  ;;  %v1720_v40 = vpop.f32.mrb[5].mxu1  ;;  %v1764_v45 = vpop.f32.mrb[7].mxu0  ;;  %v3487_v37 = vld [vmem:[%s4244_s3 + $0xe8] sm:$0xff] (!%p3228_p7)  }
 0x155   : > { %v1762_v43 = vadd.f32 %v1761_v18, %v1720_v40  ;;  %v1722_v44 = vpop.f32.mrb[6].mxu1  ;;  %v3488_v15 = vld [vmem:[%s4244_s3 + $0x28] sm:$0xff] (!%p3228_p7)   ;;  %3347 = vmatprep.subr.bf16.mxu1 (!%p3228_p7), %v3487_v37  ;;  %v3491_v40 = vld [vmem:[%s4244_s3 + $0xf0] sm:$0xff] (!%p3228_p7)   ;;  %v3494_v45 = vld [vmem:[%s4244_s3 + $0x78] sm:$0xff] (!%p3228_p7)  }
 0x156   : > { %v1932_v46 = vadd.f32 %v1760_v39, %v431_v38  ;;  %v1723_v47 = vpop.f32.mrb[7].mxu1  ;;  %v3983_v38 = vshrl.u32 (!%p3228_p7), %v1961_v34, 7  ;;  %v3489_v18 = vld [vmem:[%s4244_s3 + $0xa8] sm:$0xff] (!%p3228_p7)   ;;  %3326 = vmatpush3.bf16.msra.mxu0 (!%p3228_p7), %v3488_v15  ;;  %v3490_v39 = vld [vmem:[%s4244_s3 + $0x70] sm:$0xff] (!%p3228_p7)  }
 0x157   : > { %v1933_v48 = vadd.f32 %v1762_v43, %v432_v41  ;;  %3348 = vmatpush3.bf16.msra.mxu1 (!%p3228_p7), %v3489_v18  ;;  %3327 = vmatprep.subr.bf16.mxu0 (!%p3228_p7), %v3490_v39  ;;  %v3492_v41 = vld [vmem:[%s4244_s3 + $0x30] sm:$0xff] (!%p3228_p7)   ;;  %v3495_v47 = vld [vmem:[%s4244_s3 + $0xf8] sm:$0xff] (!%p3228_p7)  }
 0x158   : > { %1940 = vst [vmem:[#allocation2 + $0x10] sm:$0xff] %v1932_v46  ;;  %v1967_v42 = vsub.s32 (!%p3228_p7), 1, %v3983_v38  ;;  %3349 = vmatprep.subr.bf16.mxu1 (!%p3228_p7), %v3491_v40  ;;  %v3493_v43 = vld [vmem:[%s4244_s3 + $0xb0] sm:$0xff] (!%p3228_p7)   ;;  %v1975_v44 = vsub.s32 (!%p3228_p7), 3, %v3983_v38  ;;  %v1963_v46 = vsub.s32 (!%p3228_p7), 0, %v3983_v38  ;;  %v1983_v27 = vsub.s32 (!%p3228_p7), 5, %v3983_v38 }
 0x159   : > { %1941 = vst [vmem:[#allocation2 + $0x18] sm:$0xff] %v1933_v48  ;;  %v1971_v48 = vsub.s32 (!%p3228_p7), 2, %v3983_v38  ;;  %v1979_v29 = vsub.s32 (!%p3228_p7), 4, %v3983_v38  ;;  %v1991_v39 = vsub.s32 (!%p3228_p7), 7, %v3983_v38  ;;  %v3516_v40 = vld [vmem:[%s4244_s3 + $0x170] sm:$0xff] (!%p3228_p7)  }
 0x15a   : > { %3328 = vmatpush3.bf16.msra.mxu0 (!%p3228_p7), %v3492_v41 }
 0x15b   : > { %3350 = vmatpush3.bf16.msra.mxu1 (!%p3228_p7), %v3493_v43  ;;  %3329 = vmatprep.subr.bf16.mxu0 (!%p3228_p7), %v3494_v45  ;;  %v3517_v43 = vld [vmem:[%s4244_s3 + $0x130] sm:$0xff] (!%p3228_p7)  }
 0x15c   : > { %3351 = vmatprep.subr.bf16.mxu1 (!%p3228_p7), %v3495_v47 }
 0x173   : > { %v1841_v9 = vpop.f32.mrb[8].mxu1 }
 0x174   : > { %v1843_v49 = vpop.f32.mrb[9].mxu1 }
 0x175   : > { %v1845_v50 = vpop.f32.mrb[10].mxu1 }
 0x176   : > { %v1846_v51 = vpop.f32.mrb[11].mxu1  ;;  %v1952_v50 = vld [vmem:[#allocation2 + $0x8] sm:$0xff] (!%p3228_p7) }
 0x177   : > { %v4019_v51 = vld [vmem:[%s4243_s2] sm:$0xff] (!%p3228_p7) }
 0x178   : > { %v1984_v32 = vrot.slane (!%p3228_p7), %v4019_v51, %v1983_v27  ;;  %v1980_v34 = vrot.slane (!%p3228_p7), %v4019_v51, %v1979_v29  ;;  %v1992_v47 = vrot.slane (!%p3228_p7), %v4019_v51, %v1991_v39 }
 0x191   : > { %v1800_v52 = vpop.f32.mrb[8].mxu0 }
 0x192   : > { %v1842_v53 = vadd.f32 %v1841_v9, %v1800_v52  ;;  %v1802_v55 = vpop.f32.mrb[9].mxu0  ;;  %v3496_v9 = vld [vmem:[%s4244_s3 + $0x38] sm:$0xff] (!%p3228_p7)   ;;  %v1968_v52 = vrot.slane (!%p3228_p7), %v4019_v51, %v1967_v42 }
 0x193   : > { %v1844_v56 = vadd.f32 %v1843_v49, %v1802_v55  ;;  %v1804_v57 = vpop.f32.mrb[10].mxu0  ;;  %v3497_v49 = vld [vmem:[%s4244_s3 + $0xb8] sm:$0xff] (!%p3228_p7)   ;;  %3330 = vmatpush3.bf16.msra.mxu0 (!%p3228_p7), %v3496_v9  ;;  %v1964_v55 = vrot.slane (!%p3228_p7), %v4019_v51, %v1963_v46 }
 0x194   : > { %v1934_v59 = vadd.f32 %v1842_v53, %v433_v61  ;;  %v1805_v60 = vpop.f32.mrb[11].mxu0  ;;  %v1954_v61 = vld [vmem:[#allocation2 + $0x18] sm:$0xff] (!%p3228_p7)  ;;  %3352 = vmatpush3.bf16.msra.mxu1 (!%p3228_p7), %v3497_v49  ;;  %v1976_v53 = vrot.slane (!%p3228_p7), %v4019_v51, %v1975_v44  ;;  %v1972_v57 = vrot.slane (!%p3228_p7), %v4019_v51, %v1971_v48  ;;  %v3518_v44 = vld [vmem:[%s4244_s3 + $0x1b0] sm:$0xff] (!%p3228_p7)  }
 0x195   : > { %v1935_v62 = vadd.f32 %v1844_v56, %v434_v54  ;;  %v1951_v54 = vld [vmem:[#allocation2] sm:$0xff] (!%p3228_p7)  ;;  %v1953_v56 = vld [vmem:[#allocation2 + $0x10] sm:$0xff] (!%p3228_p7)  ;;  %v3597_v60 = vmov (!%p3228_p7), 0   ;;  %v3519_v48 = vld [vmem:[%s4244_s3 + $0x178] sm:$0xff] (!%p3228_p7)  }
 0x196   : > { %1942 = vst [vmem:[#allocation2 + $0x20] sm:$0xff] %v1934_v59  ;;  %v3498_v59 = vld [vmem:[%s4244_s3 + $0x140] sm:$0xff] (!%p3228_p7)   ;;  %2675 = vmatprep.subr.bf16.mxu1 (!%p3228_p7), %v3597_v60  ;;  %v3520_v49 = vld [vmem:[%s4244_s3 + $0x138] sm:$0xff] (!%p3228_p7)  }
 0x197   : > { %1943 = vst [vmem:[#allocation2 + $0x28] sm:$0xff] %v1935_v62  ;;  %v2002_v62 = vadd.f32 (!%p3228_p7), %v1968_v52, %v1952_v50  ;;  %3359 = vmatprep.subr.bf16.mxu0 (!%p3228_p7), %v3498_v59 }
 0x199   : > { %vm2010_vm2 = vcmp.gt.f32.partialorder (!%p3228_p7), %v2002_v62, 0.0 }
 0x19d   : > { %v1955_v18 = vld [vmem:[#allocation2 + $0x20] sm:$0xff] (!%p3228_p7) }
 0x19e   : > { %v1956_v37 = vld [vmem:[#allocation2 + $0x28] sm:$0xff] (!%p3228_p7)  ;;  %v2005_v41 = vadd.f32 (!%p3228_p7), %v1980_v34, %v1955_v18 }
 0x19f   : > { %v2006_v15 = vadd.f32 (!%p3228_p7), %v1984_v32, %v1956_v37 }
 0x1a0   : > { %v2021_v46 = vmul.f32 (!%p3228_p7), 0.01, %v2005_v41  ;;  %vm2013_vm7 = vcmp.gt.f32.partialorder (!%p3228_p7), %v2005_v41, 0.0 }
 0x1a1   : > { %vm2014_vm6 = vcmp.gt.f32.partialorder (!%p3228_p7), %v2006_v15, 0.0  ;;  %v2022_v42 = vmul.f32 (!%p3228_p7), 0.01, %v2006_v15 }
 0x1a2   : > { %v2029_v52 = vsel (!%p3228_p7), %vm2013_vm7, %v2005_v41, %v2021_v46 }
 0x1a3   : > { %v2030_v45 = vsel (!%p3228_p7), %vm2014_vm6, %v2006_v15, %v2022_v42 }
 0x1a4   : > { %v2038_v9 = vpack.c.bf16 (!%p3228_p7), %v2030_v45, %v2030_v45 }
 0x1b1   : > { %v1923_v63 = vpop.f32.mrb[12].mxu0 }
 0x1b2   : > { %v1925_v2 = vpop.f32.mrb[13].mxu0 }
 0x1b3   : > { %v1882_v0 = vpop.f32.mrb[12].mxu1  ;;  %v1927_v6 = vpop.f32.mrb[14].mxu0  ;;  %1950 = sbr.rel (%p3228_p7) target bundleno = 1158 (0x486), region = 64 }
 0x1b4   : > { %v1924_v3 = vadd.f32 %v1923_v63, %v1882_v0  ;;  %v1884_v4 = vpop.f32.mrb[13].mxu1  ;;  %v1928_v10 = vpop.f32.mrb[15].mxu0  ;;  %v2004_v63 = vadd.f32 (!%p3228_p7), %v1976_v53, %v1954_v61  ;;  %v2001_v0 = vadd.f32 (!%p3228_p7), %v1964_v55, %v1951_v54  ;;  %v3521_v61 = vld [vmem:[%s4244_s3 + $0x1b8] sm:$0xff] (!%p3228_p7)   ;;  %v2037_v55 = vpack.c.bf16 (!%p3228_p7), %v2029_v52, %v2029_v52 }
 0x1b5   : > { %v1926_v7 = vadd.f32 %v1925_v2, %v1884_v4  ;;  %v1886_v8 = vpop.f32.mrb[14].mxu1  ;;  %v2018_v2 = vmul.f32 (!%p3228_p7), 0.01, %v2002_v62 }
 0x1b6   : > { %v1936_v11 = vadd.f32 %v1924_v3, %v435_v1  ;;  %v1887_v12 = vpop.f32.mrb[15].mxu1  ;;  %v2003_v1 = vadd.f32 (!%p3228_p7), %v1972_v57, %v1953_v56  ;;  %vm2012_vm3 = vcmp.gt.f32.partialorder (!%p3228_p7), %v2004_v63, 0.0  ;;  %v2020_v3 = vmul.f32 (!%p3228_p7), 0.01, %v2004_v63  ;;  %v3499_v8 = vld [vmem:[%s4244_s3 + $0x100] sm:$0xff] (!%p3228_p7)  }
 0x1b7   : > { %v1937_v13 = vadd.f32 %v1926_v7, %v436_v5  ;;  %vm2009_vm4 = vcmp.gt.f32.partialorder (!%p3228_p7), %v2001_v0, 0.0  ;;  %v2017_v4 = vmul.f32 (!%p3228_p7), 0.01, %v2001_v0  ;;  %v2026_v6 = vsel (!%p3228_p7), %vm2010_vm2, %v2002_v62, %v2018_v2  ;;  %v3522_v56 = vld [vmem:[%s4244_s3 + $0x1c0] sm:$0xff] (!%p3228_p7)   ;;  %v3523_v62 = vld [vmem:[%s4244_s3 + $0x1c8] sm:$0xff] (!%p3228_p7)  }
 0x1b8   : > { %1944 = vst [vmem:[#allocation2 + $0x30] sm:$0xff] %v1936_v11  ;;  %vm2011_vm5 = vcmp.gt.f32.partialorder (!%p3228_p7), %v2003_v1, 0.0  ;;  %v2019_v5 = vmul.f32 (!%p3228_p7), 0.01, %v2003_v1  ;;  %v2028_v7 = vsel (!%p3228_p7), %vm2012_vm3, %v2004_v63, %v2020_v3  ;;  %v2034_v10 = vpack.c.bf16 (!%p3228_p7), %v2026_v6, %v2026_v6  ;;  %v3524_v63 = vld [vmem:[%s4244_s3 + $0x1d0] sm:$0xff] (!%p3228_p7)  }
 0x1b9   : > { %1946 = vst.msk [vmem:[#allocation2 + $0x38] sm:$0xff] %vm1945_vm1, %v1937_v13  ;;  %v2036_v11 = vpack.c.bf16 (!%p3228_p7), %v2028_v7, %v2028_v7  ;;  %v2025_v12 = vsel (!%p3228_p7), %vm2009_vm4, %v2001_v0, %v2017_v4  ;;  %v1987_v0 = vsub.s32 (!%p3228_p7), 6, %v3983_v38  ;;  %v3526_v4 = vld [vmem:[%s4244_s3 + $0x1e0] sm:$0xff] (!%p3228_p7)   ;;  %v3527_v38 = vld [vmem:[%s4244_s3 + $0x1e8] sm:$0xff] (!%p3228_p7)  }
 0x1ba   : > { %v2027_v13 = vsel %vm2011_vm5, %v2003_v1, %v2019_v5  ;;  %v2033_v16 = vpack.c.bf16 %v2025_v12, %v2025_v12  ;;  %2587 = vmatprep.mubr.bf16.mxu0 %v2034_v10  ;;  %v3525_v1 = vld [vmem:[%s4244_s3 + $0x1d8] sm:$0xff]   ;;  %v3598_v12 = vmov 0.0  }
 0x1bb   : > { %v2035_v17 = vpack.c.bf16 %v2027_v13, %v2027_v13  ;;  %2627 = vmatprep.mubr.bf16.mxu1 %v2036_v11  ;;  %v1988_v2 = vrot.slane %v4019_v51, %v1987_v0  ;;  %v3528_v51 = vld [vmem:[%s4244_s3 + $0x1f0] ss:$0 sps:$4 sm:$0xff]   ;;  %v3529_v11 = vld [vmem:[%s4246_s5] sm:$0xff]   ;;  %v3530_v13 = vld [vmem:[%s4246_s5 + $0x8] sm:$0xff]  }
 0x1bc   : > { %2588 = vmatmul.mubr.bf16.vlgmr.msra.gmra.mrb[0].mxu0 %v2033_v16  ;;  %v3533_v16 = vld [vmem:[%s4246_s5 + $0x20] sm:$0xff]  }
 0x1bd   : > { %2628 = vmatmul.mubr.bf16.vlgmr.msra.gmra.mrb[0].mxu1 %v2035_v17  ;;  %3360 = vmatpush3.bf16.msra.mxu0 %v3499_v8  ;;  %v2553_v8 = vsel %vm2551_vm10, %v3528_v51, 0  ;;  %v3534_v17 = vld [vmem:[%s4246_s5 + $0x28] sm:$0xff]  }
 0x1be   : > { %2676 = vmatpush1.bf16.msra.mxu1 %v3500_v14  ;;  %3361 = vmatprep.subr.bf16.mxu0 %v3501_v19  ;;  %v3532_v14 = vld [vmem:[%s4246_s5 + $0x18] sm:$0xff]   ;;  %v3535_v19 = vld [vmem:[%s4246_s5 + $0x30] sm:$0xff]  }
 0x1bf   : > { %2677 = vmatprep.subr.bf16.mxu1 %v3597_v60  ;;  %2667 = vmatprep.mubr.bf16.mxu0 %v2038_v9  ;;  %v1957_v3 = vld [vmem:[#allocation2 + $0x30] sm:$0xff]  ;;  %v3540_v9 = vld [vmem:[%s4248_s7 + $0x18] sm:$0xff]  }
 0x1c0   : > { %v1958_v50 = vld [vmem:[#allocation2 + $0x38] sm:$0xff]  ;;  %v2007_v5 = vadd.f32 %v1988_v2, %v1957_v3 }
 0x1c1   : > { %3362 = vmatpush3.bf16.msra.mxu0 %v3502_v20  ;;  %v2008_v53 = vadd.f32 %v1992_v47, %v1958_v50  ;;  %v3536_v20 = vld [vmem:[%s4246_s5 + $0x38] sm:$0xff]  }
 0x1c2   : > { %2678 = vmatpush1.bf16.msra.mxu1 %v3503_v21  ;;  %3363 = vmatprep.subr.bf16.mxu0 %v3504_v22  ;;  %v2023_v6 = vmul.f32 0.01, %v2007_v5  ;;  %vm2015_vm9 = vcmp.gt.f32.partialorder %v2007_v5, 0.0  ;;  %v3537_v21 = vld [vmem:[%s4248_s7] sm:$0xff]   ;;  %v3538_v22 = vld [vmem:[%s4248_s7 + $0x8] sm:$0xff]  }
 0x1c3   : > { %2679 = vmatprep.subr.bf16.mxu1 %v3597_v60  ;;  %vm2016_vm8 = vcmp.gt.f32.partialorder %v2008_v53, 0.0  ;;  %v2024_v54 = vmul.f32 0.01, %v2008_v53 }
 0x1c4   : > { %v2031_v7 = vsel %vm2015_vm9, %v2007_v5, %v2023_v6 }
 0x1c5   : > { %3364 = vmatpush3.bf16.msra.mxu0 %v3505_v23  ;;  %v2032_v57 = vsel %vm2016_vm8, %v2008_v53, %v2024_v54  ;;  %v2039_v10 = vpack.c.bf16 %v2031_v7, %v2031_v7 }
 0x1c6   : > { %2680 = vmatpush1.bf16.msra.mxu1 %v3506_v24  ;;  %3365 = vmatprep.subr.bf16.mxu0 %v3507_v25  ;;  %v2040_v59 = vpack.c.bf16 %v2032_v57, %v2032_v57  ;;  %v3229_v25 = vld [vmem:[%s4245_s4] ss:$0 sm:$0xff] }
 0x1c7   : > { %2681 = vmatprep.subr.bf16.mxu1 %v3597_v60 }
 0x1c8   : > { %3293 = vmatprep.mubr.msk.bf16.mxu1 %vm1945_vm1, %v2040_v59  ;;  %v3303_v59 = vld [vmem:[%s4249_s8] ss:$0 sm:$0xff] }
 0x1c9   : > { %3366 = vmatpush3.bf16.msra.mxu0 %v3508_v26 }
 0x1ca   : > { %2682 = vmatpush1.bf16.msra.mxu1 %v3509_v58  ;;  %3367 = vmatprep.subr.bf16.mxu0 %v3510_v28 }
 0x1cb   : > { %2683 = vmatprep.subr.bf16.mxu1 %v3597_v60 }
 0x1cd   : > { %3368 = vmatpush3.bf16.msra.mxu0 %v3511_v30 }
 0x1ce   : > { %2684 = vmatpush1.bf16.msra.mxu1 %v3512_v31  ;;  %3369 = vmatprep.subr.bf16.mxu0 %v3513_v33 }
 0x1cf   : > { %2685 = vmatprep.subr.bf16.mxu1 %v3597_v60 }
 0x1d1   : > { %3370 = vmatpush3.bf16.msra.mxu0 %v3514_v35 }
 0x1d2   : > { %2686 = vmatpush1.bf16.msra.mxu1 %v3515_v36  ;;  %3371 = vmatprep.subr.bf16.mxu0 %v3516_v40 }
 0x1d3   : > { %2687 = vmatprep.subr.bf16.mxu1 %v3597_v60 }
 0x1d5   : > { %3372 = vmatpush3.bf16.msra.mxu0 %v3517_v43 }
 0x1d6   : > { %2688 = vmatpush1.bf16.msra.mxu1 %v3518_v44  ;;  %3373 = vmatprep.subr.bf16.mxu0 %v3519_v48  ;;  %v3539_v48 = vld [vmem:[%s4248_s7 + $0x10] sm:$0xff]  }
 0x1d7   : > { %2689 = vmatprep.subr.bf16.mxu1 %v3597_v60 }
 0x1d9   : > { %3374 = vmatpush3.bf16.msra.mxu0 %v3520_v49  ;;  %v3294_v49 = vld [vmem:[%s4247_s6] ss:$0 sm:$0xff] }
 0x1da   : > { %2690 = vmatpush1.bf16.msra.mxu1 %v3521_v61  ;;  %3395 = vmatprep.subr.bf16.mxu0 %v3598_v12 }
 0x1db   : > { %2691 = vmatprep.subr.bf16.mxu1 %v3597_v60 }
 0x1dc   : > { %2668 = vmatmul.mubr.bf16.vlgmr.msra.gmra.mrb[4].mxu0 %v2037_v55 }
 0x1dd   : > { %3396 = vmatpush3.bf16.msra.mxu0 %v3529_v11  ;;  %3411 = vmatprep.mubr.msk.bf16.mxu0 %vm3599_vm11, %v3598_v12 }
 0x1de   : > { %2692 = vmatpush1.bf16.msra.mxu1 %v3522_v56  ;;  %3397 = vmatprep.subr.bf16.mxu0 %v3598_v12 }
 0x1df   : > { %2693 = vmatprep.subr.bf16.mxu1 %v3597_v60 }
 0x1e1   : > { %3398 = vmatpush3.bf16.msra.mxu0 %v3530_v13 }
 0x1e2   : > { %2694 = vmatpush1.bf16.msra.mxu1 %v3523_v62  ;;  %3399 = vmatprep.subr.bf16.mxu0 %v3598_v12 }
 0x1e3   : > { %2695 = vmatprep.subr.bf16.mxu1 %v3597_v60 }
 0x1e6   : > { %2696 = vmatpush1.bf16.msra.mxu1 %v3524_v63 }
 0x1e7   : > { %2697 = vmatprep.subr.bf16.mxu1 %v3597_v60 }
 0x1ea   : > { %2698 = vmatpush1.bf16.msra.mxu1 %v3525_v1 }
 0x1eb   : > { %2699 = vmatprep.subr.bf16.mxu1 %v3597_v60 }
 0x1ee   : > { %2700 = vmatpush1.bf16.msra.mxu1 %v3526_v4 }
 0x1ef   : > { %2701 = vmatprep.subr.bf16.mxu1 %v3597_v60 }
 0x1f2   : > { %2702 = vmatpush1.bf16.msra.mxu1 %v3527_v38 }
 0x1f3   : > { %2703 = vmatprep.subr.bf16.mxu1 %v3597_v60  ;;  %v3531_v60 = vld [vmem:[%s4246_s5 + $0x10] sm:$0xff]  }
 0x1f4   : > { %3400 = vmatpush3.bf16.msra.mxu0 %v3531_v60 }
 0x1f5   : > { %3401 = vmatprep.subr.bf16.mxu0 %v3598_v12 }
 0x1f6   : > { %2704 = vmatpush1.bf16.msra.mxu1 %v2553_v8 }
 0x1f7   : > { %3415 = vmatprep.subr.bf16.mxu1 %v3598_v12 }
 0x1f8   : > { %3402 = vmatpush3.bf16.msra.mxu0 %v3532_v14 }
 0x1f9   : > { %2708 = vmatmul.mubr.bf16.vlgmr.msra.gmra.mrb[4].mxu1 %v2039_v10  ;;  %3403 = vmatprep.subr.bf16.mxu0 %v3598_v12 }
 0x1fa   : > { %3423 = vmatprep.mubr.msk.bf16.mxu1 %vm3599_vm11, %v3598_v12  ;;  %3416 = vmatpush3.bf16.msra.mxu1 %v3537_v21 }
 0x1fb   : > { %3417 = vmatprep.subr.bf16.mxu1 %v3598_v12 }
 0x1fc   : > { %3404 = vmatpush3.bf16.msra.mxu0 %v3533_v16 }
 0x1fd   : > { %3405 = vmatprep.subr.bf16.mxu0 %v3598_v12 }
 0x1fe   : > { %3418 = vmatpush3.bf16.msra.mxu1 %v3538_v22 }
 0x1ff   : > { %3419 = vmatprep.subr.bf16.mxu1 %v3598_v12 }
 0x200   : > { %3406 = vmatpush3.bf16.msra.mxu0 %v3534_v17 }
 0x201   : > { %3407 = vmatprep.subr.bf16.mxu0 %v3598_v12 }
 0x202   : > { %3420 = vmatpush3.bf16.msra.mxu1 %v3539_v48 }
 0x203   : > { %3421 = vmatprep.subr.bf16.mxu1 %v3598_v12 }
 0x204   : > { %3408 = vmatpush3.bf16.msra.mxu0 %v3535_v19 }
 0x205   : > { %3409 = vmatprep.subr.bf16.mxu0 %v3598_v12 }
 0x206   : > { %3422 = vmatpush3.bf16.msra.mxu1 %v3540_v9 }
 0x208   : > { %3410 = vmatpush3.bf16.msra.mxu0 %v3536_v20 }
 0x28f   : > { %v3331_v23 = vpop.f32.mrb[0].mxu0 }
 0x290   : > { %v3353_v24 = vpop.f32.mrb[0].mxu1  ;;  %v3332_v26 = vpop.f32.mrb[1].mxu0 }
 0x291   : > { %v3354_v58 = vpop.f32.mrb[1].mxu1  ;;  %v3333_v27 = vadd.f32 %v3332_v26, %v3331_v23  ;;  %v3334_v30 = vpop.f32.mrb[2].mxu0 }
 0x292   : > { %v3355_v28 = vadd.f32 %v3354_v58, %v3353_v24  ;;  %v3356_v29 = vpop.f32.mrb[2].mxu1  ;;  %v3335_v32 = vpop.f32.mrb[3].mxu0 }
 0x293   : > { %v3357_v31 = vpop.f32.mrb[3].mxu1  ;;  %v2590_v33 = vadd.f32 %v3333_v27, %v3229_v25 }
 0x295   : > { %v2630_v34 = vadd.f32 %v3355_v28, %v2590_v33 }
 0x2af   : > { %v3375_v35 = vpop.f32.mrb[4].mxu0 }
 0x2b0   : > { %v3376_v36 = vpop.f32.mrb[5].mxu0 }
 0x2b1   : > { %v3377_v37 = vadd.f32 %v3376_v36, %v3375_v35  ;;  %v3378_v15 = vpop.f32.mrb[6].mxu0 }
 0x2b2   : > { %v3379_v18 = vpop.f32.mrb[7].mxu0 }
 0x2b3   : > { %v2670_v39 = vadd.f32 %v3377_v37, %v2630_v34 }
 0x2cc   : > { %v2709_v40 = vpop.f32.mrb[4].mxu1 }
 0x2cd   : > { %v2710_v41 = vadd.f32 %v2709_v40, %v2670_v39  ;;  %v2711_v42 = vpop.f32.mrb[5].mxu1 }
 0x2ce   : > { %v2712_v43 = vpop.f32.mrb[6].mxu1 }
 0x2cf   : > { %vm2715_vm12 = vcmp.gt.f32.partialorder %v2710_v41, 0.0  ;;  %v2716_v44 = vmul.f32 0.01, %v2710_v41  ;;  %v2713_v45 = vpop.f32.mrb[7].mxu1 }
 0x2d1   : > { %v2717_v46 = vsel %vm2715_vm12, %v2710_v41, %v2716_v44 }
 0x2d2   : > { %v2718_v47 = vpack.c.bf16 %v2717_v46, %v2717_v46 }
 0x2d4   : > { %3412 = vmatmul.mubr.bf16.vlgmr.msra.gmra.mrb[8].mxu0 %v2718_v47 }
 0x3a7   : > { %v2824_v50 = vpop.f32.mrb[8].mxu0 }
 0x3a8   : > { %v2825_v61 = vadd.f32 %v3294_v49, %v2824_v50  ;;  %v3413_v52 = vpop.f32.mrb[9].mxu0 }
 0x3a9   : > { %v2827_v53 = vpop.f32.mrb[10].mxu0 }
 0x3aa   : > { %vm2830_vm13 = vcmp.gt.f32.partialorder %v2825_v61, 0.0  ;;  %v2831_v54 = vmul.f32 0.01, %v2825_v61  ;;  %v3414_v55 = vpop.f32.mrb[11].mxu0 }
 0x3ac   : > { %v2832_v56 = vsel %vm2830_vm13, %v2825_v61, %v2831_v54 }
 0x3ad   : > { %v2835_v57 = vpack.c.bf16 %v2832_v56, %v2832_v56  ;;  %2834 = vst.msk [vmem:[#allocation3] sm:$0xff] %vm2833_vm14, %v2832_v56 }
 0x3af   : > { %3424 = vmatmul.mubr.msk.bf16.vlgmr.msra.gmra.mrb[8].mxu1 %vm2833_vm14, %v2835_v57 }
 0x482   : > { %v2912_v62 = vpop.f32.mrb[8].mxu1 }
 0x483   : > { %v2913_v63 = vadd.f32 %v3303_v59, %v2912_v62  ;;  %v3425_v0 = vpop.f32.mrb[9].mxu1 }
 0x484   : > { %v2915_v1 = vpop.f32.mrb[10].mxu1 }
 0x485   : > { %2919 = vst.msk [vmem:[%s4250_s9] sm:$0xff] %vm2918_vm15, %v2913_v63  ;;  %v3426_v2 = vpop.f32.mrb[11].mxu1 }
 0x486 PF: > { %p4206_p8 = scmp.eq.s32.totalorder %s3025_s16, 5  ;;  %s3600_s29 = smov [#allocation3]  }
 0x487   : > { %s2936_s30 = sshll.u32 %s3600_s29, 4  ;;  %s2937_s30 = int_to_ptr.vmem [resolvable:$true] %s2936_s30 }
 0x488   : > { %s3541_s11 = scalar_lea.vmem %s2937_s30, 128  ;;  %p3548_p12 = scmp.lt.s32.totalorder %s2937_s30, %s2937_s30 }
 0x489   : > { %p3542_p9 = scmp.ne.s32.totalorder %s2937_s30, %s3541_s11  ;;  %p3549_p13 = scmp.lt.s32.totalorder %s3541_s11, %s3541_s11 }
 0x48b   : > { %p3543_p10 = pnand %p3542_p9, %p4206_p8  ;;  %p3550_p0 = por %p3549_p13, %p3548_p12 }
 0x48d   : > { %p3544_p11 = pneg %p3543_p10 }
 0x48f   : > { %p3551_p1 = pnand %p3550_p0, %p3544_p11 }
 0x491   : > { %3554 = shalt.err (!%p3551_p1)
}
 0x492   : > { %s3555_s16 = scalar_lea.hbm %s4251_s10, 128 }
 0x493   : > { %p3556_p2 = scmp.ne.s32.totalorder %s4251_s10, %s3555_s16  ;;  %p3561_p5 = scmp.lt.u32.totalorder %s3555_s16, %s4251_s10 }
 0x495   : > { %p3557_p3 = pnand %p3556_p2, %p4206_p8 }
 0x497   : > { %p3558_p4 = pneg %p3557_p3 }
 0x499   : > { %p3563_p6 = pnand %p3561_p5, %p3558_p4 }
 0x49b   : > { %3566 = shalt.err (!%p3563_p6)
}
 0x49c   : > { %3428 = dma.vmem_to_hbm [thread:$0]  (%p4206_p8), %s2937_s30, 128, %s4251_s10, [#allocation4]  }
 0x49d   : > { %3580 = dma.done.wait (%p4206_p8), [#allocation4], 128  }
 0x49e   : > { %3582 = vsyncadd (%p4206_p8), [#allocation4], 4294967168 }
 0x49f PF: > { %s22_s15 = sadd.s32 1, %s3593_s15   ;;  %s4253_s13 = smov %s3589_s14 }
 0x4a0   : > { %p19_p7 = scmp.ge.s32.totalorder %s22_s15, 8   ;;  %s4254_s14 = smov %s4256_s17 }
 0x4a2   :  { %21 = sbr.rel (!%p19_p7) target bundleno = 2 (0x2), region = 107 }
 0x4a9   :  { %2956 = vsyncpa [#allocation4], 1 }
 0x4aa   :  { %2958 = vsyncpa [#allocation4 + $0x1], 1 }

</bundles_post_ra>
